<compile_context>
chip_gen: v7x
topology: tpu7x:2x2x1
jax: 0.10.0
libtpu: 0.0.40
codegen_flags: <defaults>
</compile_context>

<pallas_src>
import jax
import jax.numpy as jnp
from jax.experimental import pallas as pl
from jax.experimental.pallas import tpu as pltpu

NEG_SLOPE = 0.01   # F.leaky_relu default
BN_EPS = 1e-5      # torch.nn.BatchNorm1d default
NEG_BIG = 1e30


# --------------------------------- kernel ------------------------------------

def _tgcn_kernel(
    x_ref, a_ref, m_ref,
    # conv_G_1 + bn1_G
    g1_wrel_ref, g1_wroot_ref, g1_b_ref, bn1g_ref,
    # conv_T_2 + bn2_T
    t2_t_ref, t2_wt_ref, t2_wroot_ref, t2_b_ref, bn2t_ref,
    # conv_G_2 + bn2_G
    g2_wrel_ref, g2_wroot_ref, g2_b_ref, bn2g_ref,
    # conv_T_3 + bn3_T
    t3_t_ref, t3_wt_ref, t3_wroot_ref, t3_b_ref, bn3t_ref,
    # conv_G_3 + bn3_G
    g3_wrel_ref, g3_wroot_ref, g3_b_ref, bn3g_ref,
    # head: bn4, lin1, lin2, lin3
    bn4_ref, w1_ref, b1_ref, w2_ref, b2_ref, w3_ref, b3_ref,
    # output
    o_ref,
    # scratch
    feats_ref,
):
  f32 = jnp.float32
  bf16 = jnp.bfloat16

  def mxu(a, b):
    # bf16 operands, f32 accumulation on the MXU.
    return jnp.dot(a.astype(bf16), b.astype(bf16), preferred_element_type=f32)

  def leaky(v):
    return jnp.where(v > 0, v, NEG_SLOPE * v)

  def bn(v, p_ref):
    # p_ref is (2, C): row 0 = scale, row 1 = shift (pre-folded on host).
    return v * p_ref[0:1, :] + p_ref[1:2, :]

  a = a_ref[...]                 # (N, N) bf16, {0,1}
  m = m_ref[...]                 # (G, N) bf16, {0,1}
  x0 = x_ref[...]                # (N, Cin) f32

  # degree / graph-size reciprocals, computed from resident tiles.
  deg = jnp.sum(a.astype(f32), axis=1, keepdims=True)          # (N, 1)
  dinv = jnp.where(deg > 0, 1.0 / deg, 0.0)
  m_f = m.astype(f32)
  cnt = jnp.sum(m_f, axis=1, keepdims=True)                    # (G, 1)
  cnt_inv = jnp.where(cnt > 0, 1.0 / cnt, 0.0)

  # hoisted mask pieces for the vectorized segment-max (reused by all pools).
  mb = m_f[:, :, None]                                         # (G, N, 1)
  neg_off = (mb - 1.0) * NEG_BIG                               # 0 / -1e30

  def graph_conv(x, wrel_ref, wroot_ref, b_ref):
    # torch_geometric GraphConv: lin_rel(A @ x) + lin_root(x) + bias.
    agg = mxu(a, x)
    return mxu(agg, wrel_ref[...]) + mxu(x, wroot_ref[...]) + b_ref[...]

  def tangent_conv(x, t_ref, wt_ref, wroot_ref, b_ref):
    # TODO(synk): TangentGraphConv source is not provided with the module;
    # approximated as a tangent-space projection of the mean neighbor
    # difference:  d_i = mean_{j in N(i)} (x_j - x_i);
    #              out = (d @ T) @ W_t + x @ W_root + b.
    agg = mxu(a, x)
    diff = agg * dinv - x
    proj = mxu(diff, t_ref[...])
    return mxu(proj, wt_ref[...]) + mxu(x, wroot_ref[...]) + b_ref[...]

  def pool3(x):
    # [global_max_pool, global_mean_pool, global_add_pool] of x over graphs.
    s = mxu(m, x)                                              # (G, C') sum
    mean = s * cnt_inv
    masked = x[None, :, :] * mb + neg_off                      # (G, N, C')
    mx = jnp.max(masked, axis=1)                               # (G, C') max
    return mx, mean, s

  # ---- layer 1 ----
  xg1 = bn(leaky(graph_conv(x0, g1_wrel_ref, g1_wroot_ref, g1_b_ref)), bn1g_ref)
  mx1, me1, s1 = pool3(xg1)

  # ---- layer 2 ----
  xt2 = bn(leaky(tangent_conv(xg1, t2_t_ref, t2_wt_ref, t2_wroot_ref, t2_b_ref)),
           bn2t_ref)
  xg2 = bn(leaky(graph_conv(xg1, g2_wrel_ref, g2_wroot_ref, g2_b_ref)), bn2g_ref)
  mxt2, met2, st2 = pool3(xt2)
  mxg2, meg2, sg2 = pool3(xg2)

  # ---- layer 3 ----
  xt3 = bn(leaky(tangent_conv(leaky(xt2), t3_t_ref, t3_wt_ref, t3_wroot_ref,
                              t3_b_ref)), bn3t_ref)
  xg3 = bn(leaky(graph_conv(xg2, g3_wrel_ref, g3_wroot_ref, g3_b_ref)), bn3g_ref)
  mxt3, met3, st3 = pool3(xt3)
  mxg3, meg3, sg3 = pool3(xg3)

  # ---- assemble pooled features (G, 15C) in VMEM scratch ----
  # Torch layout: x1 = [max|mean|sum](x_G1); x2/x3 = [max|mean|sum](cat[T,G]).
  cdim = mx1.shape[1]

  def put(col, v):
    feats_ref[:, col * cdim:(col + 1) * cdim] = v

  put(0, mx1); put(1, me1); put(2, s1)
  put(3, mxt2); put(4, mxg2); put(5, met2); put(6, meg2); put(7, st2); put(8, sg2)
  put(9, mxt3); put(10, mxg3); put(11, met3); put(12, meg3); put(13, st3); put(14, sg3)
  feats = feats_ref[...]                                       # (G, 15C)

  # ---- head: bn4 -> lin1 -> relu -> lin2 -> relu -> lin3 -> log_softmax ----
  # (dropout p = 0 -> identity)
  h = bn(feats, bn4_ref)
  h = jnp.maximum(mxu(h, w1_ref[...]) + b1_ref[...], 0.0)
  h = jnp.maximum(mxu(h, w2_ref[...]) + b2_ref[...], 0.0)
  logits = mxu(h, w3_ref[...]) + b3_ref[...]
  mmax = jnp.max(logits, axis=-1, keepdims=True)
  lse = jnp.log(jnp.sum(jnp.exp(logits - mmax), axis=-1, keepdims=True)) + mmax
  o_ref[...] = (logits - lse).astype(o_ref.dtype)


# ------------------------------- wrapper --------------------------------------

def _fold_bn(p):
  """Fold BatchNorm1d (eval) into a (2, C) [scale; shift] operand."""
  scale = p["gamma"] * jax.lax.rsqrt(p["var"] + BN_EPS)
  shift = p["beta"] - p["mean"] * scale
  return jnp.concatenate([scale, shift], axis=0).astype(jnp.float32)


def tgcn_forward(params, x, adj, member):
  g = member.shape[0]
  c = params["conv_G_1"]["w_rel"].shape[1]
  n_class = params["lin3"]["w"].shape[1]
  feat = 15 * c

  bf = lambda a: a.astype(jnp.bfloat16)

  inputs = [
      x.astype(jnp.float32), bf(adj), bf(member),
      # conv_G_1 + bn1_G
      bf(params["conv_G_1"]["w_rel"]), bf(params["conv_G_1"]["w_root"]),
      params["conv_G_1"]["b"], _fold_bn(params["bn1_G"]),
      # conv_T_2 + bn2_T
      bf(params["conv_T_2"]["T"]), bf(params["conv_T_2"]["w_t"]),
      bf(params["conv_T_2"]["w_root"]), params["conv_T_2"]["b"],
      _fold_bn(params["bn2_T"]),
      # conv_G_2 + bn2_G
      bf(params["conv_G_2"]["w_rel"]), bf(params["conv_G_2"]["w_root"]),
      params["conv_G_2"]["b"], _fold_bn(params["bn2_G"]),
      # conv_T_3 + bn3_T
      bf(params["conv_T_3"]["T"]), bf(params["conv_T_3"]["w_t"]),
      bf(params["conv_T_3"]["w_root"]), params["conv_T_3"]["b"],
      _fold_bn(params["bn3_T"]),
      # conv_G_3 + bn3_G
      bf(params["conv_G_3"]["w_rel"]), bf(params["conv_G_3"]["w_root"]),
      params["conv_G_3"]["b"], _fold_bn(params["bn3_G"]),
      # head
      _fold_bn(params["bn4"]),
      bf(params["lin1"]["w"]), params["lin1"]["b"],
      bf(params["lin2"]["w"]), params["lin2"]["b"],
      bf(params["lin3"]["w"]), params["lin3"]["b"],
  ]

  return pl.pallas_call(
      _tgcn_kernel,
      out_shape=jax.ShapeDtypeStruct((g, n_class), jnp.float32),
      in_specs=[pl.BlockSpec(memory_space=pltpu.MemorySpace.VMEM)
                for _ in inputs],
      out_specs=pl.BlockSpec(memory_space=pltpu.MemorySpace.VMEM),
      scratch_shapes=[pltpu.VMEM((g, feat), jnp.float32)],
  )(*inputs)


# ------------------------------ parameter init ---------------------------------

def init_params(key, in_channels, out_channels, k, n_class):
  c = out_channels
  feat = (c + c * 2 * 2) * 3   # 15 * c
  keys = iter(jax.random.split(key, 64))

  def dense(shape, scale=0.1):
    return scale * jax.random.normal(next(keys), shape, dtype=jnp.float32)

  def graph_conv(cin, cout):
    return {"w_rel": dense((cin, cout)),
            "w_root": dense((cin, cout)),
            "b": dense((1, cout), 0.01)}

  def tangent_conv(cin, cout, kk):
    return {"T": dense((cin, kk)),
            "w_t": dense((kk, cout)),
            "w_root": dense((cin, cout)),
            "b": dense((1, cout), 0.01)}

  def bn(dim):
    return {"gamma": 1.0 + dense((1, dim), 0.05),
            "beta": dense((1, dim), 0.05),
            "mean": dense((1, dim), 0.05),
            "var": 1.0 + jnp.abs(dense((1, dim), 0.05))}

  def lin(din, dout):
    return {"w": dense((din, dout)), "b": dense((1, dout), 0.01)}

  return {
      # NOTE: bn0 exists in __init__ but is never used in forward(); skipped.
      "conv_G_1": graph_conv(in_channels, c),
      "conv_G_2": graph_conv(c, c),
      "conv_G_3": graph_conv(c, c),
      "conv_T_2": tangent_conv(c, c, k),
      "conv_T_3": tangent_conv(c, c, k),
      "bn1_G": bn(c), "bn2_T": bn(c), "bn2_G": bn(c),
      "bn3_T": bn(c), "bn3_G": bn(c), "bn4": bn(feat),
      "lin1": lin(feat, c),
      "lin2": lin(c, c // 2),
      "lin3": lin(c // 2, n_class),
  }


# ----------------------------------- main --------------------------------------

if __name__ == "__main__":
  in_channels, out_channels, k, n_class = 8, 32, 8, 8
  num_graphs, nodes_per_graph = 4, 8
  n = num_graphs * nodes_per_graph

  key = jax.random.PRNGKey(0)
  k_param, k_x = jax.random.split(key)

  params = init_params(k_param, in_channels, out_channels, k, n_class)

  # Node features.
  x = jax.random.normal(k_x, (n, in_channels), dtype=jnp.float32)

  # Dense adjacency: a ring inside each graph (undirected).
  idx = jnp.arange(n)
  gid = idx // nodes_per_graph
  loc = idx % nodes_per_graph
  nxt = gid * nodes_per_graph + (loc + 1) % nodes_per_graph
  adj = jnp.zeros((n, n), dtype=jnp.float32)
  adj = adj.at[idx, nxt].set(1.0)
  adj = adj.at[nxt, idx].set(1.0)

  # Dense graph-membership (the torch_geometric `batch` vector).
  member = (gid[None, :] == jnp.arange(num_graphs)[:, None]).astype(jnp.float32)

  fwd = jax.jit(tgcn_forward)
  out = fwd(params, x, adj, member)
  out = jax.block_until_ready(out)

  assert out.shape == (num_graphs, n_class)
  assert bool(jnp.all(jnp.isfinite(out)))
  # log_softmax rows should exponentiate-sum to ~1.
  assert bool(jnp.allclose(jnp.sum(jnp.exp(out), axis=-1), 1.0, atol=1e-4))
  print("KERNEL_OK")
</pallas_src>

<mosaic_0001>
module attributes {stable_mosaic.version = 11 : i64} {
  func.func @_tgcn_kernel(%arg0: memref<32x8xf32, #tpu.memory_space<vmem>>, %arg1: memref<32x32xbf16, #tpu.memory_space<vmem>>, %arg2: memref<4x32xbf16, #tpu.memory_space<vmem>>, %arg3: memref<8x32xbf16, #tpu.memory_space<vmem>>, %arg4: memref<8x32xbf16, #tpu.memory_space<vmem>>, %arg5: memref<1x32xf32, #tpu.memory_space<vmem>>, %arg6: memref<2x32xf32, #tpu.memory_space<vmem>>, %arg7: memref<32x8xbf16, #tpu.memory_space<vmem>>, %arg8: memref<8x32xbf16, #tpu.memory_space<vmem>>, %arg9: memref<32x32xbf16, #tpu.memory_space<vmem>>, %arg10: memref<1x32xf32, #tpu.memory_space<vmem>>, %arg11: memref<2x32xf32, #tpu.memory_space<vmem>>, %arg12: memref<32x32xbf16, #tpu.memory_space<vmem>>, %arg13: memref<32x32xbf16, #tpu.memory_space<vmem>>, %arg14: memref<1x32xf32, #tpu.memory_space<vmem>>, %arg15: memref<2x32xf32, #tpu.memory_space<vmem>>, %arg16: memref<32x8xbf16, #tpu.memory_space<vmem>>, %arg17: memref<8x32xbf16, #tpu.memory_space<vmem>>, %arg18: memref<32x32xbf16, #tpu.memory_space<vmem>>, %arg19: memref<1x32xf32, #tpu.memory_space<vmem>>, %arg20: memref<2x32xf32, #tpu.memory_space<vmem>>, %arg21: memref<32x32xbf16, #tpu.memory_space<vmem>>, %arg22: memref<32x32xbf16, #tpu.memory_space<vmem>>, %arg23: memref<1x32xf32, #tpu.memory_space<vmem>>, %arg24: memref<2x32xf32, #tpu.memory_space<vmem>>, %arg25: memref<2x480xf32, #tpu.memory_space<vmem>>, %arg26: memref<480x32xbf16, #tpu.memory_space<vmem>>, %arg27: memref<1x32xf32, #tpu.memory_space<vmem>>, %arg28: memref<32x16xbf16, #tpu.memory_space<vmem>>, %arg29: memref<1x16xf32, #tpu.memory_space<vmem>>, %arg30: memref<16x8xbf16, #tpu.memory_space<vmem>>, %arg31: memref<1x8xf32, #tpu.memory_space<vmem>>, %arg32: memref<4x8xf32, #tpu.memory_space<vmem>>, %arg33: memref<4x480xf32, #tpu.memory_space<vmem>>) attributes {dimension_semantics = [], scalar_prefetch = 0 : i64, scratch_operands = 1 : i64, tpu.core_type = #tpu.core_type<tc>} {
    %c0 = arith.constant 0 : index
    %c0_0 = arith.constant 0 : index
    %0 = vector.load %arg1[%c0, %c0_0] : memref<32x32xbf16, #tpu.memory_space<vmem>>, vector<32x32xbf16>
    %c0_1 = arith.constant 0 : index
    %c0_2 = arith.constant 0 : index
    %1 = vector.load %arg2[%c0_1, %c0_2] : memref<4x32xbf16, #tpu.memory_space<vmem>>, vector<4x32xbf16>
    %c0_3 = arith.constant 0 : index
    %c0_4 = arith.constant 0 : index
    %2 = vector.load %arg0[%c0_3, %c0_4] : memref<32x8xf32, #tpu.memory_space<vmem>>, vector<32x8xf32>
    %3 = arith.extf %0 : vector<32x32xbf16> to vector<32x32xf32>
    %cst = arith.constant dense<0.000000e+00> : vector<32xf32>
    %4 = vector.multi_reduction <add>, %3, %cst [1] : vector<32x32xf32> to vector<32xf32>
    %5 = vector.shape_cast %4 : vector<32xf32> to vector<32x1xf32>
    %cst_5 = arith.constant 0.000000e+00 : f32
    %6 = vector.broadcast %cst_5 : f32 to vector<32x1xf32>
    %7 = arith.cmpf ogt, %5, %6 : vector<32x1xf32>
    %cst_6 = arith.constant 1.000000e+00 : f32
    %8 = vector.broadcast %cst_6 : f32 to vector<32x1xf32>
    %9 = arith.divf %8, %5 : vector<32x1xf32>
    %cst_7 = arith.constant 0.000000e+00 : f32
    %10 = vector.broadcast %cst_7 : f32 to vector<32x1xf32>
    %11 = arith.select %7, %9, %10 : vector<32x1xi1>, vector<32x1xf32>
    %12 = arith.extf %1 : vector<4x32xbf16> to vector<4x32xf32>
    %cst_8 = arith.constant dense<0.000000e+00> : vector<4xf32>
    %13 = vector.multi_reduction <add>, %12, %cst_8 [1] : vector<4x32xf32> to vector<4xf32>
    %14 = vector.shape_cast %13 : vector<4xf32> to vector<4x1xf32>
    %cst_9 = arith.constant 0.000000e+00 : f32
    %15 = vector.broadcast %cst_9 : f32 to vector<4x1xf32>
    %16 = arith.cmpf ogt, %14, %15 : vector<4x1xf32>
    %cst_10 = arith.constant 1.000000e+00 : f32
    %17 = vector.broadcast %cst_10 : f32 to vector<4x1xf32>
    %18 = arith.divf %17, %14 : vector<4x1xf32>
    %cst_11 = arith.constant 0.000000e+00 : f32
    %19 = vector.broadcast %cst_11 : f32 to vector<4x1xf32>
    %20 = arith.select %16, %18, %19 : vector<4x1xi1>, vector<4x1xf32>
    %21 = vector.shape_cast %12 : vector<4x32xf32> to vector<4x32x1xf32>
    %cst_12 = arith.constant 1.000000e+00 : f32
    %22 = vector.broadcast %cst_12 : f32 to vector<4x32x1xf32>
    %23 = arith.subf %21, %22 : vector<4x32x1xf32>
    %cst_13 = arith.constant 1.000000e+30 : f32
    %24 = vector.broadcast %cst_13 : f32 to vector<4x32x1xf32>
    %25 = arith.mulf %23, %24 : vector<4x32x1xf32>
    %26 = arith.truncf %2 : vector<32x8xf32> to vector<32x8xbf16>
    %cst_14 = arith.constant dense<0.000000e+00> : vector<32x8xf32>
    %27 = tpu.matmul %0, %26, %cst_14 {dimension_numbers = #tpu.dot_dimension_numbers<[1], [0], [0], [1], [0, 0, 1, 1], [], []>} : vector<32x32xbf16>, vector<32x8xbf16>, vector<32x8xf32> -> vector<32x8xf32>
    %c0_15 = arith.constant 0 : index
    %c0_16 = arith.constant 0 : index
    %28 = vector.load %arg3[%c0_15, %c0_16] : memref<8x32xbf16, #tpu.memory_space<vmem>>, vector<8x32xbf16>
    %29 = arith.truncf %27 : vector<32x8xf32> to vector<32x8xbf16>
    %cst_17 = arith.constant dense<0.000000e+00> : vector<32x32xf32>
    %30 = tpu.matmul %29, %28, %cst_17 {dimension_numbers = #tpu.dot_dimension_numbers<[1], [0], [0], [1], [0, 0, 1, 1], [], []>} : vector<32x8xbf16>, vector<8x32xbf16>, vector<32x32xf32> -> vector<32x32xf32>
    %c0_18 = arith.constant 0 : index
    %c0_19 = arith.constant 0 : index
    %31 = vector.load %arg4[%c0_18, %c0_19] : memref<8x32xbf16, #tpu.memory_space<vmem>>, vector<8x32xbf16>
    %32 = arith.truncf %2 : vector<32x8xf32> to vector<32x8xbf16>
    %cst_20 = arith.constant dense<0.000000e+00> : vector<32x32xf32>
    %33 = tpu.matmul %32, %31, %cst_20 {dimension_numbers = #tpu.dot_dimension_numbers<[1], [0], [0], [1], [0, 0, 1, 1], [], []>} : vector<32x8xbf16>, vector<8x32xbf16>, vector<32x32xf32> -> vector<32x32xf32>
    %34 = arith.addf %30, %33 : vector<32x32xf32>
    %c0_21 = arith.constant 0 : index
    %c0_22 = arith.constant 0 : index
    %35 = vector.load %arg5[%c0_21, %c0_22] : memref<1x32xf32, #tpu.memory_space<vmem>>, vector<1x32xf32>
    %36 = vector.broadcast %35 : vector<1x32xf32> to vector<32x32xf32>
    %37 = arith.addf %34, %36 : vector<32x32xf32>
    %cst_23 = arith.constant 0.000000e+00 : f32
    %38 = vector.broadcast %cst_23 : f32 to vector<32x32xf32>
    %39 = arith.cmpf ogt, %37, %38 : vector<32x32xf32>
    %cst_24 = arith.constant 0.00999999977 : f32
    %40 = vector.broadcast %cst_24 : f32 to vector<32x32xf32>
    %41 = arith.mulf %40, %37 : vector<32x32xf32>
    %42 = arith.select %39, %37, %41 : vector<32x32xi1>, vector<32x32xf32>
    %c0_25 = arith.constant 0 : index
    %c0_26 = arith.constant 0 : index
    %43 = vector.load %arg6[%c0_25, %c0_26] : memref<2x32xf32, #tpu.memory_space<vmem>>, vector<1x32xf32>
    %44 = vector.broadcast %43 : vector<1x32xf32> to vector<32x32xf32>
    %45 = arith.mulf %42, %44 : vector<32x32xf32>
    %c1 = arith.constant 1 : index
    %c0_27 = arith.constant 0 : index
    %46 = vector.load %arg6[%c1, %c0_27] : memref<2x32xf32, #tpu.memory_space<vmem>>, vector<1x32xf32>
    %47 = vector.broadcast %46 : vector<1x32xf32> to vector<32x32xf32>
    %48 = arith.addf %45, %47 : vector<32x32xf32>
    %49 = arith.truncf %48 : vector<32x32xf32> to vector<32x32xbf16>
    %cst_28 = arith.constant dense<0.000000e+00> : vector<4x32xf32>
    %50 = tpu.matmul %1, %49, %cst_28 {dimension_numbers = #tpu.dot_dimension_numbers<[1], [0], [0], [1], [0, 0, 1, 1], [], []>} : vector<4x32xbf16>, vector<32x32xbf16>, vector<4x32xf32> -> vector<4x32xf32>
    %51 = vector.broadcast %20 : vector<4x1xf32> to vector<4x32xf32>
    %52 = arith.mulf %50, %51 : vector<4x32xf32>
    %53 = vector.shape_cast %48 : vector<32x32xf32> to vector<1x32x32xf32>
    %54 = vector.broadcast %53 : vector<1x32x32xf32> to vector<4x32x32xf32>
    %55 = vector.broadcast %21 : vector<4x32x1xf32> to vector<4x32x32xf32>
    %56 = arith.mulf %54, %55 : vector<4x32x32xf32>
    %57 = vector.broadcast %25 : vector<4x32x1xf32> to vector<4x32x32xf32>
    %58 = arith.addf %56, %57 : vector<4x32x32xf32>
    %cst_29 = arith.constant dense<0xFF800000> : vector<4x32xf32>
    %59 = vector.multi_reduction <maximumf>, %58, %cst_29 [1] : vector<4x32x32xf32> to vector<4x32xf32>
    %60 = arith.truncf %48 : vector<32x32xf32> to vector<32x32xbf16>
    %cst_30 = arith.constant dense<0.000000e+00> : vector<32x32xf32>
    %61 = tpu.matmul %0, %60, %cst_30 {dimension_numbers = #tpu.dot_dimension_numbers<[1], [0], [0], [1], [0, 0, 1, 1], [], []>} : vector<32x32xbf16>, vector<32x32xbf16>, vector<32x32xf32> -> vector<32x32xf32>
    %62 = vector.broadcast %11 : vector<32x1xf32> to vector<32x32xf32>
    %63 = arith.mulf %61, %62 : vector<32x32xf32>
    %64 = arith.subf %63, %48 : vector<32x32xf32>
    %c0_31 = arith.constant 0 : index
    %c0_32 = arith.constant 0 : index
    %65 = vector.load %arg7[%c0_31, %c0_32] : memref<32x8xbf16, #tpu.memory_space<vmem>>, vector<32x8xbf16>
    %66 = arith.truncf %64 : vector<32x32xf32> to vector<32x32xbf16>
    %cst_33 = arith.constant dense<0.000000e+00> : vector<32x8xf32>
    %67 = tpu.matmul %66, %65, %cst_33 {dimension_numbers = #tpu.dot_dimension_numbers<[1], [0], [0], [1], [0, 0, 1, 1], [], []>} : vector<32x32xbf16>, vector<32x8xbf16>, vector<32x8xf32> -> vector<32x8xf32>
    %c0_34 = arith.constant 0 : index
    %c0_35 = arith.constant 0 : index
    %68 = vector.load %arg8[%c0_34, %c0_35] : memref<8x32xbf16, #tpu.memory_space<vmem>>, vector<8x32xbf16>
    %69 = arith.truncf %67 : vector<32x8xf32> to vector<32x8xbf16>
    %cst_36 = arith.constant dense<0.000000e+00> : vector<32x32xf32>
    %70 = tpu.matmul %69, %68, %cst_36 {dimension_numbers = #tpu.dot_dimension_numbers<[1], [0], [0], [1], [0, 0, 1, 1], [], []>} : vector<32x8xbf16>, vector<8x32xbf16>, vector<32x32xf32> -> vector<32x32xf32>
    %c0_37 = arith.constant 0 : index
    %c0_38 = arith.constant 0 : index
    %71 = vector.load %arg9[%c0_37, %c0_38] : memref<32x32xbf16, #tpu.memory_space<vmem>>, vector<32x32xbf16>
    %72 = arith.truncf %48 : vector<32x32xf32> to vector<32x32xbf16>
    %cst_39 = arith.constant dense<0.000000e+00> : vector<32x32xf32>
    %73 = tpu.matmul %72, %71, %cst_39 {dimension_numbers = #tpu.dot_dimension_numbers<[1], [0], [0], [1], [0, 0, 1, 1], [], []>} : vector<32x32xbf16>, vector<32x32xbf16>, vector<32x32xf32> -> vector<32x32xf32>
    %74 = arith.addf %70, %73 : vector<32x32xf32>
    %c0_40 = arith.constant 0 : index
    %c0_41 = arith.constant 0 : index
    %75 = vector.load %arg10[%c0_40, %c0_41] : memref<1x32xf32, #tpu.memory_space<vmem>>, vector<1x32xf32>
    %76 = vector.broadcast %75 : vector<1x32xf32> to vector<32x32xf32>
    %77 = arith.addf %74, %76 : vector<32x32xf32>
    %cst_42 = arith.constant 0.000000e+00 : f32
    %78 = vector.broadcast %cst_42 : f32 to vector<32x32xf32>
    %79 = arith.cmpf ogt, %77, %78 : vector<32x32xf32>
    %cst_43 = arith.constant 0.00999999977 : f32
    %80 = vector.broadcast %cst_43 : f32 to vector<32x32xf32>
    %81 = arith.mulf %80, %77 : vector<32x32xf32>
    %82 = arith.select %79, %77, %81 : vector<32x32xi1>, vector<32x32xf32>
    %c0_44 = arith.constant 0 : index
    %c0_45 = arith.constant 0 : index
    %83 = vector.load %arg11[%c0_44, %c0_45] : memref<2x32xf32, #tpu.memory_space<vmem>>, vector<1x32xf32>
    %84 = vector.broadcast %83 : vector<1x32xf32> to vector<32x32xf32>
    %85 = arith.mulf %82, %84 : vector<32x32xf32>
    %c1_46 = arith.constant 1 : index
    %c0_47 = arith.constant 0 : index
    %86 = vector.load %arg11[%c1_46, %c0_47] : memref<2x32xf32, #tpu.memory_space<vmem>>, vector<1x32xf32>
    %87 = vector.broadcast %86 : vector<1x32xf32> to vector<32x32xf32>
    %88 = arith.addf %85, %87 : vector<32x32xf32>
    %89 = arith.truncf %48 : vector<32x32xf32> to vector<32x32xbf16>
    %cst_48 = arith.constant dense<0.000000e+00> : vector<32x32xf32>
    %90 = tpu.matmul %0, %89, %cst_48 {dimension_numbers = #tpu.dot_dimension_numbers<[1], [0], [0], [1], [0, 0, 1, 1], [], []>} : vector<32x32xbf16>, vector<32x32xbf16>, vector<32x32xf32> -> vector<32x32xf32>
    %c0_49 = arith.constant 0 : index
    %c0_50 = arith.constant 0 : index
    %91 = vector.load %arg12[%c0_49, %c0_50] : memref<32x32xbf16, #tpu.memory_space<vmem>>, vector<32x32xbf16>
    %92 = arith.truncf %90 : vector<32x32xf32> to vector<32x32xbf16>
    %cst_51 = arith.constant dense<0.000000e+00> : vector<32x32xf32>
    %93 = tpu.matmul %92, %91, %cst_51 {dimension_numbers = #tpu.dot_dimension_numbers<[1], [0], [0], [1], [0, 0, 1, 1], [], []>} : vector<32x32xbf16>, vector<32x32xbf16>, vector<32x32xf32> -> vector<32x32xf32>
    %c0_52 = arith.constant 0 : index
    %c0_53 = arith.constant 0 : index
    %94 = vector.load %arg13[%c0_52, %c0_53] : memref<32x32xbf16, #tpu.memory_space<vmem>>, vector<32x32xbf16>
    %95 = arith.truncf %48 : vector<32x32xf32> to vector<32x32xbf16>
    %cst_54 = arith.constant dense<0.000000e+00> : vector<32x32xf32>
    %96 = tpu.matmul %95, %94, %cst_54 {dimension_numbers = #tpu.dot_dimension_numbers<[1], [0], [0], [1], [0, 0, 1, 1], [], []>} : vector<32x32xbf16>, vector<32x32xbf16>, vector<32x32xf32> -> vector<32x32xf32>
    %97 = arith.addf %93, %96 : vector<32x32xf32>
    %c0_55 = arith.constant 0 : index
    %c0_56 = arith.constant 0 : index
    %98 = vector.load %arg14[%c0_55, %c0_56] : memref<1x32xf32, #tpu.memory_space<vmem>>, vector<1x32xf32>
    %99 = vector.broadcast %98 : vector<1x32xf32> to vector<32x32xf32>
    %100 = arith.addf %97, %99 : vector<32x32xf32>
    %cst_57 = arith.constant 0.000000e+00 : f32
    %101 = vector.broadcast %cst_57 : f32 to vector<32x32xf32>
    %102 = arith.cmpf ogt, %100, %101 : vector<32x32xf32>
    %cst_58 = arith.constant 0.00999999977 : f32
    %103 = vector.broadcast %cst_58 : f32 to vector<32x32xf32>
    %104 = arith.mulf %103, %100 : vector<32x32xf32>
    %105 = arith.select %102, %100, %104 : vector<32x32xi1>, vector<32x32xf32>
    %c0_59 = arith.constant 0 : index
    %c0_60 = arith.constant 0 : index
    %106 = vector.load %arg15[%c0_59, %c0_60] : memref<2x32xf32, #tpu.memory_space<vmem>>, vector<1x32xf32>
    %107 = vector.broadcast %106 : vector<1x32xf32> to vector<32x32xf32>
    %108 = arith.mulf %105, %107 : vector<32x32xf32>
    %c1_61 = arith.constant 1 : index
    %c0_62 = arith.constant 0 : index
    %109 = vector.load %arg15[%c1_61, %c0_62] : memref<2x32xf32, #tpu.memory_space<vmem>>, vector<1x32xf32>
    %110 = vector.broadcast %109 : vector<1x32xf32> to vector<32x32xf32>
    %111 = arith.addf %108, %110 : vector<32x32xf32>
    %112 = arith.truncf %88 : vector<32x32xf32> to vector<32x32xbf16>
    %cst_63 = arith.constant dense<0.000000e+00> : vector<4x32xf32>
    %113 = tpu.matmul %1, %112, %cst_63 {dimension_numbers = #tpu.dot_dimension_numbers<[1], [0], [0], [1], [0, 0, 1, 1], [], []>} : vector<4x32xbf16>, vector<32x32xbf16>, vector<4x32xf32> -> vector<4x32xf32>
    %114 = vector.broadcast %20 : vector<4x1xf32> to vector<4x32xf32>
    %115 = arith.mulf %113, %114 : vector<4x32xf32>
    %116 = vector.shape_cast %88 : vector<32x32xf32> to vector<1x32x32xf32>
    %117 = vector.broadcast %116 : vector<1x32x32xf32> to vector<4x32x32xf32>
    %118 = vector.broadcast %21 : vector<4x32x1xf32> to vector<4x32x32xf32>
    %119 = arith.mulf %117, %118 : vector<4x32x32xf32>
    %120 = vector.broadcast %25 : vector<4x32x1xf32> to vector<4x32x32xf32>
    %121 = arith.addf %119, %120 : vector<4x32x32xf32>
    %cst_64 = arith.constant dense<0xFF800000> : vector<4x32xf32>
    %122 = vector.multi_reduction <maximumf>, %121, %cst_64 [1] : vector<4x32x32xf32> to vector<4x32xf32>
    %123 = arith.truncf %111 : vector<32x32xf32> to vector<32x32xbf16>
    %cst_65 = arith.constant dense<0.000000e+00> : vector<4x32xf32>
    %124 = tpu.matmul %1, %123, %cst_65 {dimension_numbers = #tpu.dot_dimension_numbers<[1], [0], [0], [1], [0, 0, 1, 1], [], []>} : vector<4x32xbf16>, vector<32x32xbf16>, vector<4x32xf32> -> vector<4x32xf32>
    %125 = vector.broadcast %20 : vector<4x1xf32> to vector<4x32xf32>
    %126 = arith.mulf %124, %125 : vector<4x32xf32>
    %127 = vector.shape_cast %111 : vector<32x32xf32> to vector<1x32x32xf32>
    %128 = vector.broadcast %127 : vector<1x32x32xf32> to vector<4x32x32xf32>
    %129 = vector.broadcast %21 : vector<4x32x1xf32> to vector<4x32x32xf32>
    %130 = arith.mulf %128, %129 : vector<4x32x32xf32>
    %131 = vector.broadcast %25 : vector<4x32x1xf32> to vector<4x32x32xf32>
    %132 = arith.addf %130, %131 : vector<4x32x32xf32>
    %cst_66 = arith.constant dense<0xFF800000> : vector<4x32xf32>
    %133 = vector.multi_reduction <maximumf>, %132, %cst_66 [1] : vector<4x32x32xf32> to vector<4x32xf32>
    %cst_67 = arith.constant 0.000000e+00 : f32
    %134 = vector.broadcast %cst_67 : f32 to vector<32x32xf32>
    %135 = arith.cmpf ogt, %88, %134 : vector<32x32xf32>
    %cst_68 = arith.constant 0.00999999977 : f32
    %136 = vector.broadcast %cst_68 : f32 to vector<32x32xf32>
    %137 = arith.mulf %136, %88 : vector<32x32xf32>
    %138 = arith.select %135, %88, %137 : vector<32x32xi1>, vector<32x32xf32>
    %139 = arith.truncf %138 : vector<32x32xf32> to vector<32x32xbf16>
    %cst_69 = arith.constant dense<0.000000e+00> : vector<32x32xf32>
    %140 = tpu.matmul %0, %139, %cst_69 {dimension_numbers = #tpu.dot_dimension_numbers<[1], [0], [0], [1], [0, 0, 1, 1], [], []>} : vector<32x32xbf16>, vector<32x32xbf16>, vector<32x32xf32> -> vector<32x32xf32>
    %141 = vector.broadcast %11 : vector<32x1xf32> to vector<32x32xf32>
    %142 = arith.mulf %140, %141 : vector<32x32xf32>
    %143 = arith.subf %142, %138 : vector<32x32xf32>
    %c0_70 = arith.constant 0 : index
    %c0_71 = arith.constant 0 : index
    %144 = vector.load %arg16[%c0_70, %c0_71] : memref<32x8xbf16, #tpu.memory_space<vmem>>, vector<32x8xbf16>
    %145 = arith.truncf %143 : vector<32x32xf32> to vector<32x32xbf16>
    %cst_72 = arith.constant dense<0.000000e+00> : vector<32x8xf32>
    %146 = tpu.matmul %145, %144, %cst_72 {dimension_numbers = #tpu.dot_dimension_numbers<[1], [0], [0], [1], [0, 0, 1, 1], [], []>} : vector<32x32xbf16>, vector<32x8xbf16>, vector<32x8xf32> -> vector<32x8xf32>
    %c0_73 = arith.constant 0 : index
    %c0_74 = arith.constant 0 : index
    %147 = vector.load %arg17[%c0_73, %c0_74] : memref<8x32xbf16, #tpu.memory_space<vmem>>, vector<8x32xbf16>
    %148 = arith.truncf %146 : vector<32x8xf32> to vector<32x8xbf16>
    %cst_75 = arith.constant dense<0.000000e+00> : vector<32x32xf32>
    %149 = tpu.matmul %148, %147, %cst_75 {dimension_numbers = #tpu.dot_dimension_numbers<[1], [0], [0], [1], [0, 0, 1, 1], [], []>} : vector<32x8xbf16>, vector<8x32xbf16>, vector<32x32xf32> -> vector<32x32xf32>
    %c0_76 = arith.constant 0 : index
    %c0_77 = arith.constant 0 : index
    %150 = vector.load %arg18[%c0_76, %c0_77] : memref<32x32xbf16, #tpu.memory_space<vmem>>, vector<32x32xbf16>
    %151 = arith.truncf %138 : vector<32x32xf32> to vector<32x32xbf16>
    %cst_78 = arith.constant dense<0.000000e+00> : vector<32x32xf32>
    %152 = tpu.matmul %151, %150, %cst_78 {dimension_numbers = #tpu.dot_dimension_numbers<[1], [0], [0], [1], [0, 0, 1, 1], [], []>} : vector<32x32xbf16>, vector<32x32xbf16>, vector<32x32xf32> -> vector<32x32xf32>
    %153 = arith.addf %149, %152 : vector<32x32xf32>
    %c0_79 = arith.constant 0 : index
    %c0_80 = arith.constant 0 : index
    %154 = vector.load %arg19[%c0_79, %c0_80] : memref<1x32xf32, #tpu.memory_space<vmem>>, vector<1x32xf32>
    %155 = vector.broadcast %154 : vector<1x32xf32> to vector<32x32xf32>
    %156 = arith.addf %153, %155 : vector<32x32xf32>
    %cst_81 = arith.constant 0.000000e+00 : f32
    %157 = vector.broadcast %cst_81 : f32 to vector<32x32xf32>
    %158 = arith.cmpf ogt, %156, %157 : vector<32x32xf32>
    %cst_82 = arith.constant 0.00999999977 : f32
    %159 = vector.broadcast %cst_82 : f32 to vector<32x32xf32>
    %160 = arith.mulf %159, %156 : vector<32x32xf32>
    %161 = arith.select %158, %156, %160 : vector<32x32xi1>, vector<32x32xf32>
    %c0_83 = arith.constant 0 : index
    %c0_84 = arith.constant 0 : index
    %162 = vector.load %arg20[%c0_83, %c0_84] : memref<2x32xf32, #tpu.memory_space<vmem>>, vector<1x32xf32>
    %163 = vector.broadcast %162 : vector<1x32xf32> to vector<32x32xf32>
    %164 = arith.mulf %161, %163 : vector<32x32xf32>
    %c1_85 = arith.constant 1 : index
    %c0_86 = arith.constant 0 : index
    %165 = vector.load %arg20[%c1_85, %c0_86] : memref<2x32xf32, #tpu.memory_space<vmem>>, vector<1x32xf32>
    %166 = vector.broadcast %165 : vector<1x32xf32> to vector<32x32xf32>
    %167 = arith.addf %164, %166 : vector<32x32xf32>
    %168 = arith.truncf %111 : vector<32x32xf32> to vector<32x32xbf16>
    %cst_87 = arith.constant dense<0.000000e+00> : vector<32x32xf32>
    %169 = tpu.matmul %0, %168, %cst_87 {dimension_numbers = #tpu.dot_dimension_numbers<[1], [0], [0], [1], [0, 0, 1, 1], [], []>} : vector<32x32xbf16>, vector<32x32xbf16>, vector<32x32xf32> -> vector<32x32xf32>
    %c0_88 = arith.constant 0 : index
    %c0_89 = arith.constant 0 : index
    %170 = vector.load %arg21[%c0_88, %c0_89] : memref<32x32xbf16, #tpu.memory_space<vmem>>, vector<32x32xbf16>
    %171 = arith.truncf %169 : vector<32x32xf32> to vector<32x32xbf16>
    %cst_90 = arith.constant dense<0.000000e+00> : vector<32x32xf32>
    %172 = tpu.matmul %171, %170, %cst_90 {dimension_numbers = #tpu.dot_dimension_numbers<[1], [0], [0], [1], [0, 0, 1, 1], [], []>} : vector<32x32xbf16>, vector<32x32xbf16>, vector<32x32xf32> -> vector<32x32xf32>
    %c0_91 = arith.constant 0 : index
    %c0_92 = arith.constant 0 : index
    %173 = vector.load %arg22[%c0_91, %c0_92] : memref<32x32xbf16, #tpu.memory_space<vmem>>, vector<32x32xbf16>
    %174 = arith.truncf %111 : vector<32x32xf32> to vector<32x32xbf16>
    %cst_93 = arith.constant dense<0.000000e+00> : vector<32x32xf32>
    %175 = tpu.matmul %174, %173, %cst_93 {dimension_numbers = #tpu.dot_dimension_numbers<[1], [0], [0], [1], [0, 0, 1, 1], [], []>} : vector<32x32xbf16>, vector<32x32xbf16>, vector<32x32xf32> -> vector<32x32xf32>
    %176 = arith.addf %172, %175 : vector<32x32xf32>
    %c0_94 = arith.constant 0 : index
    %c0_95 = arith.constant 0 : index
    %177 = vector.load %arg23[%c0_94, %c0_95] : memref<1x32xf32, #tpu.memory_space<vmem>>, vector<1x32xf32>
    %178 = vector.broadcast %177 : vector<1x32xf32> to vector<32x32xf32>
    %179 = arith.addf %176, %178 : vector<32x32xf32>
    %cst_96 = arith.constant 0.000000e+00 : f32
    %180 = vector.broadcast %cst_96 : f32 to vector<32x32xf32>
    %181 = arith.cmpf ogt, %179, %180 : vector<32x32xf32>
    %cst_97 = arith.constant 0.00999999977 : f32
    %182 = vector.broadcast %cst_97 : f32 to vector<32x32xf32>
    %183 = arith.mulf %182, %179 : vector<32x32xf32>
    %184 = arith.select %181, %179, %183 : vector<32x32xi1>, vector<32x32xf32>
    %c0_98 = arith.constant 0 : index
    %c0_99 = arith.constant 0 : index
    %185 = vector.load %arg24[%c0_98, %c0_99] : memref<2x32xf32, #tpu.memory_space<vmem>>, vector<1x32xf32>
    %186 = vector.broadcast %185 : vector<1x32xf32> to vector<32x32xf32>
    %187 = arith.mulf %184, %186 : vector<32x32xf32>
    %c1_100 = arith.constant 1 : index
    %c0_101 = arith.constant 0 : index
    %188 = vector.load %arg24[%c1_100, %c0_101] : memref<2x32xf32, #tpu.memory_space<vmem>>, vector<1x32xf32>
    %189 = vector.broadcast %188 : vector<1x32xf32> to vector<32x32xf32>
    %190 = arith.addf %187, %189 : vector<32x32xf32>
    %191 = arith.truncf %167 : vector<32x32xf32> to vector<32x32xbf16>
    %cst_102 = arith.constant dense<0.000000e+00> : vector<4x32xf32>
    %192 = tpu.matmul %1, %191, %cst_102 {dimension_numbers = #tpu.dot_dimension_numbers<[1], [0], [0], [1], [0, 0, 1, 1], [], []>} : vector<4x32xbf16>, vector<32x32xbf16>, vector<4x32xf32> -> vector<4x32xf32>
    %193 = vector.broadcast %20 : vector<4x1xf32> to vector<4x32xf32>
    %194 = arith.mulf %192, %193 : vector<4x32xf32>
    %195 = vector.shape_cast %167 : vector<32x32xf32> to vector<1x32x32xf32>
    %196 = vector.broadcast %195 : vector<1x32x32xf32> to vector<4x32x32xf32>
    %197 = vector.broadcast %21 : vector<4x32x1xf32> to vector<4x32x32xf32>
    %198 = arith.mulf %196, %197 : vector<4x32x32xf32>
    %199 = vector.broadcast %25 : vector<4x32x1xf32> to vector<4x32x32xf32>
    %200 = arith.addf %198, %199 : vector<4x32x32xf32>
    %cst_103 = arith.constant dense<0xFF800000> : vector<4x32xf32>
    %201 = vector.multi_reduction <maximumf>, %200, %cst_103 [1] : vector<4x32x32xf32> to vector<4x32xf32>
    %202 = arith.truncf %190 : vector<32x32xf32> to vector<32x32xbf16>
    %cst_104 = arith.constant dense<0.000000e+00> : vector<4x32xf32>
    %203 = tpu.matmul %1, %202, %cst_104 {dimension_numbers = #tpu.dot_dimension_numbers<[1], [0], [0], [1], [0, 0, 1, 1], [], []>} : vector<4x32xbf16>, vector<32x32xbf16>, vector<4x32xf32> -> vector<4x32xf32>
    %204 = vector.broadcast %20 : vector<4x1xf32> to vector<4x32xf32>
    %205 = arith.mulf %203, %204 : vector<4x32xf32>
    %206 = vector.shape_cast %190 : vector<32x32xf32> to vector<1x32x32xf32>
    %207 = vector.broadcast %206 : vector<1x32x32xf32> to vector<4x32x32xf32>
    %208 = vector.broadcast %21 : vector<4x32x1xf32> to vector<4x32x32xf32>
    %209 = arith.mulf %207, %208 : vector<4x32x32xf32>
    %210 = vector.broadcast %25 : vector<4x32x1xf32> to vector<4x32x32xf32>
    %211 = arith.addf %209, %210 : vector<4x32x32xf32>
    %cst_105 = arith.constant dense<0xFF800000> : vector<4x32xf32>
    %212 = vector.multi_reduction <maximumf>, %211, %cst_105 [1] : vector<4x32x32xf32> to vector<4x32xf32>
    %c0_106 = arith.constant 0 : index
    %c0_107 = arith.constant 0 : index
    %213 = vector.load %arg33[%c0_106, %c0_107] : memref<4x480xf32, #tpu.memory_space<vmem>>, vector<4x32xf32>
    tpu.vector_store %arg33[%c0_106, %c0_107], %59 {strides = array<i32>} : memref<4x480xf32, #tpu.memory_space<vmem>>, vector<4x32xf32>,
    %c0_108 = arith.constant 0 : index
    %c32 = arith.constant 32 : index
    %214 = vector.load %arg33[%c0_108, %c32] : memref<4x480xf32, #tpu.memory_space<vmem>>, vector<4x32xf32>
    tpu.vector_store %arg33[%c0_108, %c32], %52 {strides = array<i32>} : memref<4x480xf32, #tpu.memory_space<vmem>>, vector<4x32xf32>,
    %c0_109 = arith.constant 0 : index
    %c64 = arith.constant 64 : index
    %215 = vector.load %arg33[%c0_109, %c64] : memref<4x480xf32, #tpu.memory_space<vmem>>, vector<4x32xf32>
    tpu.vector_store %arg33[%c0_109, %c64], %50 {strides = array<i32>} : memref<4x480xf32, #tpu.memory_space<vmem>>, vector<4x32xf32>,
    %c0_110 = arith.constant 0 : index
    %c96 = arith.constant 96 : index
    %216 = vector.load %arg33[%c0_110, %c96] : memref<4x480xf32, #tpu.memory_space<vmem>>, vector<4x32xf32>
    tpu.vector_store %arg33[%c0_110, %c96], %122 {strides = array<i32>} : memref<4x480xf32, #tpu.memory_space<vmem>>, vector<4x32xf32>,
    %c0_111 = arith.constant 0 : index
    %c128 = arith.constant 128 : index
    %217 = vector.load %arg33[%c0_111, %c128] : memref<4x480xf32, #tpu.memory_space<vmem>>, vector<4x32xf32>
    tpu.vector_store %arg33[%c0_111, %c128], %133 {strides = array<i32>} : memref<4x480xf32, #tpu.memory_space<vmem>>, vector<4x32xf32>,
    %c0_112 = arith.constant 0 : index
    %c160 = arith.constant 160 : index
    %218 = vector.load %arg33[%c0_112, %c160] : memref<4x480xf32, #tpu.memory_space<vmem>>, vector<4x32xf32>
    tpu.vector_store %arg33[%c0_112, %c160], %115 {strides = array<i32>} : memref<4x480xf32, #tpu.memory_space<vmem>>, vector<4x32xf32>,
    %c0_113 = arith.constant 0 : index
    %c192 = arith.constant 192 : index
    %219 = vector.load %arg33[%c0_113, %c192] : memref<4x480xf32, #tpu.memory_space<vmem>>, vector<4x32xf32>
    tpu.vector_store %arg33[%c0_113, %c192], %126 {strides = array<i32>} : memref<4x480xf32, #tpu.memory_space<vmem>>, vector<4x32xf32>,
    %c0_114 = arith.constant 0 : index
    %c224 = arith.constant 224 : index
    %220 = vector.load %arg33[%c0_114, %c224] : memref<4x480xf32, #tpu.memory_space<vmem>>, vector<4x32xf32>
    tpu.vector_store %arg33[%c0_114, %c224], %113 {strides = array<i32>} : memref<4x480xf32, #tpu.memory_space<vmem>>, vector<4x32xf32>,
    %c0_115 = arith.constant 0 : index
    %c256 = arith.constant 256 : index
    %221 = vector.load %arg33[%c0_115, %c256] : memref<4x480xf32, #tpu.memory_space<vmem>>, vector<4x32xf32>
    tpu.vector_store %arg33[%c0_115, %c256], %124 {strides = array<i32>} : memref<4x480xf32, #tpu.memory_space<vmem>>, vector<4x32xf32>,
    %c0_116 = arith.constant 0 : index
    %c288 = arith.constant 288 : index
    %222 = vector.load %arg33[%c0_116, %c288] : memref<4x480xf32, #tpu.memory_space<vmem>>, vector<4x32xf32>
    tpu.vector_store %arg33[%c0_116, %c288], %201 {strides = array<i32>} : memref<4x480xf32, #tpu.memory_space<vmem>>, vector<4x32xf32>,
    %c0_117 = arith.constant 0 : index
    %c320 = arith.constant 320 : index
    %223 = vector.load %arg33[%c0_117, %c320] : memref<4x480xf32, #tpu.memory_space<vmem>>, vector<4x32xf32>
    tpu.vector_store %arg33[%c0_117, %c320], %212 {strides = array<i32>} : memref<4x480xf32, #tpu.memory_space<vmem>>, vector<4x32xf32>,
    %c0_118 = arith.constant 0 : index
    %c352 = arith.constant 352 : index
    %224 = vector.load %arg33[%c0_118, %c352] : memref<4x480xf32, #tpu.memory_space<vmem>>, vector<4x32xf32>
    tpu.vector_store %arg33[%c0_118, %c352], %194 {strides = array<i32>} : memref<4x480xf32, #tpu.memory_space<vmem>>, vector<4x32xf32>,
    %c0_119 = arith.constant 0 : index
    %c384 = arith.constant 384 : index
    %225 = vector.load %arg33[%c0_119, %c384] : memref<4x480xf32, #tpu.memory_space<vmem>>, vector<4x32xf32>
    tpu.vector_store %arg33[%c0_119, %c384], %205 {strides = array<i32>} : memref<4x480xf32, #tpu.memory_space<vmem>>, vector<4x32xf32>,
    %c0_120 = arith.constant 0 : index
    %c416 = arith.constant 416 : index
    %226 = vector.load %arg33[%c0_120, %c416] : memref<4x480xf32, #tpu.memory_space<vmem>>, vector<4x32xf32>
    tpu.vector_store %arg33[%c0_120, %c416], %192 {strides = array<i32>} : memref<4x480xf32, #tpu.memory_space<vmem>>, vector<4x32xf32>,
    %c0_121 = arith.constant 0 : index
    %c448 = arith.constant 448 : index
    %227 = vector.load %arg33[%c0_121, %c448] : memref<4x480xf32, #tpu.memory_space<vmem>>, vector<4x32xf32>
    tpu.vector_store %arg33[%c0_121, %c448], %203 {strides = array<i32>} : memref<4x480xf32, #tpu.memory_space<vmem>>, vector<4x32xf32>,
    %c0_122 = arith.constant 0 : index
    %c0_123 = arith.constant 0 : index
    %228 = vector.load %arg33[%c0_122, %c0_123] : memref<4x480xf32, #tpu.memory_space<vmem>>, vector<4x480xf32>
    %c0_124 = arith.constant 0 : index
    %c0_125 = arith.constant 0 : index
    %229 = vector.load %arg25[%c0_124, %c0_125] : memref<2x480xf32, #tpu.memory_space<vmem>>, vector<1x480xf32>
    %230 = vector.broadcast %229 : vector<1x480xf32> to vector<4x480xf32>
    %231 = arith.mulf %228, %230 : vector<4x480xf32>
    %c1_126 = arith.constant 1 : index
    %c0_127 = arith.constant 0 : index
    %232 = vector.load %arg25[%c1_126, %c0_127] : memref<2x480xf32, #tpu.memory_space<vmem>>, vector<1x480xf32>
    %233 = vector.broadcast %232 : vector<1x480xf32> to vector<4x480xf32>
    %234 = arith.addf %231, %233 : vector<4x480xf32>
    %c0_128 = arith.constant 0 : index
    %c0_129 = arith.constant 0 : index
    %235 = vector.load %arg26[%c0_128, %c0_129] : memref<480x32xbf16, #tpu.memory_space<vmem>>, vector<480x32xbf16>
    %236 = arith.truncf %234 : vector<4x480xf32> to vector<4x480xbf16>
    %cst_130 = arith.constant dense<0.000000e+00> : vector<4x32xf32>
    %237 = tpu.matmul %236, %235, %cst_130 {dimension_numbers = #tpu.dot_dimension_numbers<[1], [0], [0], [1], [0, 0, 1, 1], [], []>} : vector<4x480xbf16>, vector<480x32xbf16>, vector<4x32xf32> -> vector<4x32xf32>
    %c0_131 = arith.constant 0 : index
    %c0_132 = arith.constant 0 : index
    %238 = vector.load %arg27[%c0_131, %c0_132] : memref<1x32xf32, #tpu.memory_space<vmem>>, vector<1x32xf32>
    %239 = vector.broadcast %238 : vector<1x32xf32> to vector<4x32xf32>
    %240 = arith.addf %237, %239 : vector<4x32xf32>
    %cst_133 = arith.constant 0.000000e+00 : f32
    %241 = vector.broadcast %cst_133 : f32 to vector<4x32xf32>
    %242 = arith.maximumf %240, %241 : vector<4x32xf32>
    %c0_134 = arith.constant 0 : index
    %c0_135 = arith.constant 0 : index
    %243 = vector.load %arg28[%c0_134, %c0_135] : memref<32x16xbf16, #tpu.memory_space<vmem>>, vector<32x16xbf16>
    %244 = arith.truncf %242 : vector<4x32xf32> to vector<4x32xbf16>
    %cst_136 = arith.constant dense<0.000000e+00> : vector<4x16xf32>
    %245 = tpu.matmul %244, %243, %cst_136 {dimension_numbers = #tpu.dot_dimension_numbers<[1], [0], [0], [1], [0, 0, 1, 1], [], []>} : vector<4x32xbf16>, vector<32x16xbf16>, vector<4x16xf32> -> vector<4x16xf32>
    %c0_137 = arith.constant 0 : index
    %c0_138 = arith.constant 0 : index
    %246 = vector.load %arg29[%c0_137, %c0_138] : memref<1x16xf32, #tpu.memory_space<vmem>>, vector<1x16xf32>
    %247 = vector.broadcast %246 : vector<1x16xf32> to vector<4x16xf32>
    %248 = arith.addf %245, %247 : vector<4x16xf32>
    %cst_139 = arith.constant 0.000000e+00 : f32
    %249 = vector.broadcast %cst_139 : f32 to vector<4x16xf32>
    %250 = arith.maximumf %248, %249 : vector<4x16xf32>
    %c0_140 = arith.constant 0 : index
    %c0_141 = arith.constant 0 : index
    %251 = vector.load %arg30[%c0_140, %c0_141] : memref<16x8xbf16, #tpu.memory_space<vmem>>, vector<16x8xbf16>
    %252 = arith.truncf %250 : vector<4x16xf32> to vector<4x16xbf16>
    %cst_142 = arith.constant dense<0.000000e+00> : vector<4x8xf32>
    %253 = tpu.matmul %252, %251, %cst_142 {dimension_numbers = #tpu.dot_dimension_numbers<[1], [0], [0], [1], [0, 0, 1, 1], [], []>} : vector<4x16xbf16>, vector<16x8xbf16>, vector<4x8xf32> -> vector<4x8xf32>
    %c0_143 = arith.constant 0 : index
    %c0_144 = arith.constant 0 : index
    %254 = vector.load %arg31[%c0_143, %c0_144] : memref<1x8xf32, #tpu.memory_space<vmem>>, vector<1x8xf32>
    %255 = vector.broadcast %254 : vector<1x8xf32> to vector<4x8xf32>
    %256 = arith.addf %253, %255 : vector<4x8xf32>
    %cst_145 = arith.constant dense<0xFF800000> : vector<4xf32>
    %257 = vector.multi_reduction <maximumf>, %256, %cst_145 [1] : vector<4x8xf32> to vector<4xf32>
    %258 = vector.shape_cast %257 : vector<4xf32> to vector<4x1xf32>
    %259 = vector.broadcast %258 : vector<4x1xf32> to vector<4x8xf32>
    %260 = arith.subf %256, %259 : vector<4x8xf32>
    %261 = math.exp %260 : vector<4x8xf32>
    %cst_146 = arith.constant dense<0.000000e+00> : vector<4xf32>
    %262 = vector.multi_reduction <add>, %261, %cst_146 [1] : vector<4x8xf32> to vector<4xf32>
    %263 = vector.shape_cast %262 : vector<4xf32> to vector<4x1xf32>
    %264 = math.log %263 : vector<4x1xf32>
    %265 = arith.addf %264, %258 : vector<4x1xf32>
    %266 = vector.broadcast %265 : vector<4x1xf32> to vector<4x8xf32>
    %267 = arith.subf %256, %266 : vector<4x8xf32>
    %c0_147 = arith.constant 0 : index
    %c0_148 = arith.constant 0 : index
    %268 = vector.load %arg32[%c0_147, %c0_148] : memref<4x8xf32, #tpu.memory_space<vmem>>, vector<4x8xf32>
    tpu.vector_store %arg32[%c0_147, %c0_148], %267 {strides = array<i32>} : memref<4x8xf32, #tpu.memory_space<vmem>>, vector<4x8xf32>,
    return
  }
}

</mosaic_0001>

<bundles_post_ra>
// kernel: tgcn_forward.1
= control target key start
LH: loop header
LB: loop body
LE: loop exit
PB: predicated region body
PF: predicated region fallthrough
CT: control target
= control target key end

     0   :  { %s3467_s6 = smov 1   ;;  %s3468_s10 = smov 2   ;;  %s4518_s0 = inlined_call_operand.smem [shape: u32[33], index: -1, kind: input, shape index: {}] }
   0x1   :  { %s3514_s5 = sld [smem:[%s4518_s0]]   ;;  %s3469_s14 = smov 3  }
   0x2   :  { %s3519_s9 = sld [smem:[%s4518_s0 + %s3467_s6]]   ;;  %s3470_s18 = smov 4  }
   0x3   :  { %s3524_s13 = sld [smem:[%s4518_s0 + %s3468_s10]]   ;;  %s3471_s22 = smov 5  }
   0x4   :  { %s3529_s17 = sld [smem:[%s4518_s0 + %s3469_s14]]   ;;  %s3472_s26 = smov 6  }
   0x5   :  { %s3534_s21 = sld [smem:[%s4518_s0 + %s3470_s18]]   ;;  %s3473_s30 = smov 7  }
   0x6   :  { %s3539_s25 = sld [smem:[%s4518_s0 + %s3471_s22]]   ;;  %s3474_s4 = smov 8  }
   0x7   :  { %s3544_s29 = sld [smem:[%s4518_s0 + %s3472_s26]]   ;;  %s3475_s10 = smov 9  }
   0x8   :  { %s3549_s3 = sld [smem:[%s4518_s0 + %s3473_s30]]   ;;  %s3476_s15 = smov 10  }
   0x9   :  { %s3554_s8 = sld [smem:[%s4518_s0 + %s3474_s4]]   ;;  %s3477_s20 = smov 11  }
   0xa   :  { %s3559_s14 = sld [smem:[%s4518_s0 + %s3475_s10]]   ;;  %s3478_s26 = smov 12  }
   0xb   :  { %s3564_s19 = sld [smem:[%s4518_s0 + %s3476_s15]]   ;;  %s3479_s1 = smov 13  }
   0xc   :  { %s3569_s24 = sld [smem:[%s4518_s0 + %s3477_s20]]   ;;  %s3480_s7 = smov 14  }
   0xd   :  { %s3574_s30 = sld [smem:[%s4518_s0 + %s3478_s26]]   ;;  %s3481_s15 = smov 15  }
   0xe   :  { %s3579_s6 = sld [smem:[%s4518_s0 + %s3479_s1]]   ;;  %s3482_s22 = smov 16  }
   0xf   :  { %s3584_s12 = sld [smem:[%s4518_s0 + %s3480_s7]]   ;;  %s3483_s28 = smov 17  }
  0x10   :  { %s3589_s20 = sld [smem:[%s4518_s0 + %s3481_s15]]   ;;  %s3484_s7 = smov 18  }
  0x11   :  { %4579 = sst [smem:[#allocation6_spill]] %s3564_s19  ;;  %s3485_s15 = smov 19  }
  0x12   :  { %4580 = sst [smem:[#allocation7_spill]] %s3569_s24 }
  0x13   :  { %s3594_s27 = sld [smem:[%s4518_s0 + %s3482_s22]]   ;;  %s3486_s22 = smov 20  }
  0x14   :  { %s3599_s4 = sld [smem:[%s4518_s0 + %s3483_s28]]   ;;  %s3487_s28 = smov 21  }
  0x15   :  { %s3604_s24 = sld [smem:[%s4518_s0 + %s3484_s7]]   ;;  %s3488_s7 = smov 22  }
  0x16   :  { %s3609_s19 = sld [smem:[%s4518_s0 + %s3485_s15]]   ;;  %s3489_s15 = smov 23  }
  0x19   :  { %4581 = sst [smem:[#allocation8_spill]] %s3594_s27 }
  0x1a   :  { %4582 = sst [smem:[#allocation9_spill]] %s3599_s4 }
  0x1b   :  { %4583 = sst [smem:[#allocation10_spill]] %s3604_s24 }
  0x1c   :  { %4584 = sst [smem:[#allocation11_spill]] %s3609_s19 }
  0x1d   :  { %s3614_s27 = sld [smem:[%s4518_s0 + %s3486_s22]]   ;;  %s3490_s22 = smov 24  }
  0x1e   :  { %s3619_s4 = sld [smem:[%s4518_s0 + %s3487_s28]]   ;;  %s3491_s28 = smov 25  }
  0x1f   :  { %s3624_s24 = sld [smem:[%s4518_s0 + %s3488_s7]]   ;;  %s3492_s7 = smov 26  }
  0x20   :  { %s3629_s19 = sld [smem:[%s4518_s0 + %s3489_s15]]   ;;  %s3493_s15 = smov 27  }
  0x23   :  { %4585 = sst [smem:[#allocation12_spill]] %s3614_s27 }
  0x24   :  { %4586 = sst [smem:[#allocation13_spill]] %s3619_s4 }
  0x25   :  { %4587 = sst [smem:[#allocation14_spill]] %s3624_s24 }
  0x26   :  { %4588 = sst [smem:[#allocation15_spill]] %s3629_s19 }
  0x27   :  { %s3634_s27 = sld [smem:[%s4518_s0 + %s3490_s22]]   ;;  %s3494_s22 = smov 28  }
  0x28   :  { %s3639_s4 = sld [smem:[%s4518_s0 + %s3491_s28]]   ;;  %s3495_s28 = smov 29  }
  0x29   :  { %s3644_s24 = sld [smem:[%s4518_s0 + %s3492_s7]]   ;;  %s3496_s7 = smov 30  }
  0x2a   :  { %s3649_s19 = sld [smem:[%s4518_s0 + %s3493_s15]]   ;;  %s3497_s15 = smov 31  }
  0x2d   :  { %4589 = sst [smem:[#allocation16_spill]] %s3634_s27 }
  0x2e   :  { %4590 = sst [smem:[#allocation17_spill]] %s3639_s4 }
  0x2f   :  { %4591 = sst [smem:[#allocation18_spill]] %s3644_s24 }
  0x30   :  { %4592 = sst [smem:[#allocation19_spill]] %s3649_s19 }
  0x31   :  { %s3654_s27 = sld [smem:[%s4518_s0 + %s3494_s22]]   ;;  %s3498_s22 = smov 32  }
  0x32   :  { %s3659_s4 = sld [smem:[%s4518_s0 + %s3495_s28]]  }
  0x33   :  { %s3664_s24 = sld [smem:[%s4518_s0 + %s3496_s7]]  }
  0x34   :  { %s3669_s19 = sld [smem:[%s4518_s0 + %s3497_s15]]  }
  0x37   :  { %4593 = sst [smem:[#allocation20_spill]] %s3654_s27 }
  0x38   :  { %s3674_s27 = sld [smem:[%s4518_s0 + %s3498_s22]]  }
  0x39   :  { %v141_v0 = vld [vmem:[%s3514_s5] sm:$0xff]  ;;  %v142_v1 = vld [vmem:[%s3514_s5 + $0x8] sm:$0xff]  ;;  %v143_v2 = vld [vmem:[%s3514_s5 + $0x10] sm:$0xff]  ;;  %vm149_vm0 = vcmask 261120   ;;  %vm373_vm1 = vcmask 1043456  }
  0x3a   :  { %v295_v3 = vpack.c.bf16 %v142_v1, %v141_v0  ;;  %v144_v4 = vld [vmem:[%s3514_s5 + $0x18] sm:$0xff]  ;;  %v3681_v5 = vld [vmem:[%s3519_s9] sm:$0xff]   ;;  %v3684_v7 = vld [vmem:[%s3519_s9 + $0x8] sm:$0xff]  }
  0x3b   :  { %4594 = vst [vmem:[#allocation21_spill] sm:$0xff] %v3681_v5  ;;  %v296_v6 = vpack.c.bf16 %v144_v4, %v143_v2  ;;  %4595 = vst [vmem:[#allocation22_spill] sm:$0xff] %v3684_v7  ;;  %3142 = vmatprep.mubr.msk.bf16.mxu0 %vm149_vm0, %v3681_v5  ;;  %v365_v8 = vld [vmem:[%s3534_s21] sm:$0xf] }
  0x3c   :  { %3138 = vmatprep.subr.bf16.mxu0 %v295_v3 }
  0x3d   :  { %3139 = vmatpush3.bf16.msra.mxu0 %v295_v3 }
  0x3e   :  { %3140 = vmatprep.subr.bf16.mxu0 %v296_v6 }
  0x41   :  { %3141 = vmatpush3.bf16.msra.mxu0 %v296_v6 }
  0x42   :  { %3332 = vmatprep.subr.msk.bf16.mxu0 %vm373_vm1, %v365_v8 }
  0x44   :  { %3143 = vmatmul.mubr.msk.bf16.vlgmr.msra.gmra.mrb[0].mxu0 %vm149_vm0, %v3684_v7 }
  0x45   :  { %70 = vsyncpa [#allocation4], 0  ;;  %v375_v9 = vsel %vm373_vm1, %v365_v8, 0  ;;  %vm4561_vm2 = vcmask 64512   ;;  %v362_v10 = vld [vmem:[%s3529_s17] sm:$0xf]  ;;  %v145_v12 = vunpack.c.l.bf16 %v3681_v5  ;;  %v146_v13 = vunpack.c.h.bf16 %v3681_v5 }
  0x46   :  { %3147 = vmatpush3.bf16.msra.mxu0 %v375_v9  ;;  %3148 = vmatprep.mubr.msk.bf16.mxu0 %vm4561_vm2, %v295_v3  ;;  %v433_v11 = vsel %vm373_vm1, %v362_v10, 0  ;;  %v147_v14 = vunpack.c.l.bf16 %v3684_v7  ;;  %v148_v15 = vunpack.c.h.bf16 %v3684_v7  ;;  %v187_v20 = vlaneseq  ;;  %v3707_v22 = vld [vmem:[%s3524_s13] sm:$0x3]  ;;  %s3501_s0 = smov 64   ;;  %s3502_s5 = smov 32  }
  0x47   :  { %3333 = vmatprep.subr.msk.bf16.mxu1 %vm373_vm1, %v362_v10  ;;  %v150_v16 = vsel %vm149_vm0, %v145_v12, 0.0  ;;  %v153_v18 = vsel %vm149_vm0, %v146_v13, 0.0  ;;  %v3710_v23 = vunpack.c.l.bf16 %v3707_v22  ;;  %v4529_v42 = vmov 0.0   ;;  %s4614_s9 = sld [smem:[#allocation8_spill]]  ;;  %s4620_s17 = sld [smem:[#allocation6_spill]] }
  0x48   :  { %3153 = vmatpush3.bf16.msra.mxu1 %v433_v11  ;;  %v156_v17 = vsel %vm149_vm0, %v147_v14, 0.0  ;;  %151 = vadd.xlane.f32.xlu0 %v150_v16  ;;  %v159_v19 = vsel %vm149_vm0, %v148_v15, 0.0  ;;  %v188_v21 = vshrl.u32 %v187_v20, 7  ;;  %vm4551_vm3 = vmmov 0   ;;  %v2934_v15 = vld [vmem:[%s3539_s25] ss:$0 sm:$0xff] }
  0x49   :  { %157 = vadd.xlane.f32.xlu1 %v156_v17  ;;  %3158 = vmatprep.subr.bf16.mxu0 %v4529_v42  ;;  %vm2201_vm8 = vcmask 1041409   ;;  %vm2203_vm9 = vcmask 1045509   ;;  %vm2206_vm10 = vcmask 1042434   ;;  %vm2208_vm11 = vcmask 1046534   ;;  %s4621_s21 = sld [smem:[#allocation7_spill]]  ;;  %s4622_s25 = sld [smem:[#allocation10_spill]] }
  0x4a   :  { %v3712_v24 = vsub.s32 1, %v188_v21  ;;  %v3716_v26 = vsub.s32 0, %v188_v21  ;;  %v3720_v28 = vsub.s32 2, %v188_v21  ;;  %v3724_v30 = vsub.s32 3, %v188_v21  ;;  %s4648_s28 = sld [smem:[#allocation16_spill]]  ;;  %s4663_s1 = sld [smem:[#allocation20_spill]] }
  0x4b   :  { %vm2211_vm12 = vcmask 1043459   ;;  %vm2213_vm13 = vcmask 1047559   ;;  %vm179_vm14 = vcmask 257024   ;;  %s4666_s2 = sld [smem:[#allocation19_spill]] }
  0x4c   :  { %3149 = vmatmul.mubr.msk.bf16.vlgmr.msra.gmra.mrb[4].mxu0 %vm4561_vm2, %v296_v6  ;;  %154 = vadd.xlane.f32.xlu0 %v153_v18  ;;  %4596 = vst [vmem:[#allocation23_spill] sm:$0xff] %v3712_v24  ;;  %v209_v25 = vrot.slane %v3710_v23, %v3712_v24  ;;  %4597 = vst [vmem:[#allocation24_spill] sm:$0xff] %v3716_v26  ;;  %v190_v27 = vrot.slane %v3710_v23, %v3716_v26 }
  0x4d   :  { %160 = vadd.xlane.f32.xlu1 %v159_v19  ;;  %4598 = vst [vmem:[#allocation25_spill] sm:$0xff] %v3720_v28  ;;  %v228_v29 = vrot.slane %v3710_v23, %v3720_v28  ;;  %4599 = vst [vmem:[#allocation26_spill] sm:$0xff] %v3724_v30  ;;  %v247_v31 = vrot.slane %v3710_v23, %v3724_v30  ;;  %3162 = vmatprep.mubr.msk.bf16.mxu0 %vm4551_vm3, %v4529_v42 }
  0x5e   :  { %215 = vbcast.lane.b32.xlu1 %v209_v25, 264 }
  0x62   :  { %192 = vbcast.lane.b32.xlu1 %v190_v27, 256  ;;  %211 = vbcast.lane.b32.xlu0 %v209_v25, 256 }
  0x66   :  { %196 = vbcast.lane.b32.xlu1 %v190_v27, 264  ;;  %219 = vbcast.lane.b32.xlu0 %v209_v25, 272 }
  0x6a   :  { %230 = vbcast.lane.b32.xlu1 %v228_v29, 256  ;;  %234 = vbcast.lane.b32.xlu0 %v228_v29, 264 }
  0x6e   :  { %200 = vbcast.lane.b32.xlu0 %v190_v27, 272 }
  0x72   :  { %223 = vbcast.lane.b32.xlu0 %v209_v25, 280 }
  0x76   :  { %238 = vbcast.lane.b32.xlu0 %v228_v29, 272 }
  0x7a   :  { %249 = vbcast.lane.b32.xlu0 %v247_v31, 256 }
  0x7e   :  { %253 = vbcast.lane.b32.xlu0 %v247_v31, 264 }
  0x82   :  { %204 = vbcast.lane.b32.xlu0 %v190_v27, 280 }
  0x86   :  { %242 = vbcast.lane.b32.xlu0 %v228_v29, 280 }
  0x8a   :  { %257 = vbcast.lane.b32.xlu0 %v247_v31, 272 }
  0x8e   :  { %261 = vbcast.lane.b32.xlu0 %v247_v31, 280 }
  0xd5   :  { %v3735_v43 = vpop.xlane.xlu0 %151 }
  0xd6   :  { %v3751_v51 = vpop.xlane.xlu1 %157 }
  0xd7   :  { %3428 = vrcp.f32 %v3751_v51  ;;  %vm164_vm15 = vcmp.gt.f32.partialorder %v3751_v51, 0.0 }
  0xd8   :  { %3430 = vrcp.f32 %v3735_v43 }
  0xd9   :  { %v3737_v44 = vpop.xlane.xlu0 %154 }
  0xda   :  { %v3755_v53 = vpop.xlane.xlu1 %160 }
  0xdb   :  { %3432 = vrcp.f32 %v3755_v53 }
  0xdc   :  { %3434 = vrcp.f32 %v3737_v44 }
  0xdd   :  { %v3739_v45 = vpop.permute.xlu0 %211 }
  0xde   :  { %v3759_v55 = vpop.permute.xlu1 %215  ;;  %v2914_v59 = vadd.f32 -1.0, %v3739_v45 }
  0xdf   :  { %v2915_v60 = vadd.f32 -1.0, %v3759_v55 }
  0xe0   :  { %v3776_v3 = vmul.f32 1e+30, %v2914_v59 }
  0xe1   :  { %v3741_v46 = vpop.permute.xlu0 %219  ;;  %v3780_v8 = vmul.f32 1e+30, %v2915_v60 }
  0xe2   :  { %v3763_v57 = vpop.permute.xlu1 %192  ;;  %v2916_v61 = vadd.f32 -1.0, %v3741_v46 }
  0xe4   :  { %v3784_v10 = vmul.f32 1e+30, %v2916_v61  ;;  %v2935_v61 = vld [vmem:[%s3544_s29] ss:$0 sm:$0xff] }
  0xe5   :  { %v3743_v47 = vpop.permute.xlu0 %234 }
  0xe6   :  { %4600 = vst [vmem:[#allocation27_spill] sm:$0xff] %v3743_v47  ;;  %v2919_v62 = vadd.f32 -1.0, %v3743_v47  ;;  %v3774_v2 = vpop.permute.xlu1 %196 }
  0xe8   :  { %v3786_v11 = vmul.f32 1e+30, %v2919_v62 }
  0xe9   :  { %v3745_v48 = vpop.permute.xlu0 %200 }
  0xea   :  { %v2912_v63 = vadd.f32 -1.0, %v3745_v48  ;;  %4602 = vst [vmem:[#allocation29_spill] sm:$0xff] %v3786_v11 }
  0xec   :  { %v3789_v13 = vmul.f32 1e+30, %v2912_v63  ;;  %v2911_v63 = vadd.f32 -1.0, %v3774_v2 }
  0xed   :  { %v3747_v49 = vpop.permute.xlu0 %223 }
  0xee   :  { %v2917_v0 = vadd.f32 -1.0, %v3747_v49  ;;  %v3824_v28 = vmul.f32 1e+30, %v2911_v63 }
  0xf0   :  { %v3792_v16 = vmul.f32 1e+30, %v2917_v0 }
  0xf1   :  { %v3749_v50 = vpop.permute.xlu0 %238 }
  0xf2   :  { %v2920_v1 = vadd.f32 -1.0, %v3749_v50 }
  0xf4   :  { %v3794_v17 = vmul.f32 1e+30, %v2920_v1 }
  0xf5   :  { %v3753_v52 = vpop.permute.xlu0 %249 }
  0xf6   :  { %v2922_v4 = vadd.f32 -1.0, %v3753_v52 }
  0xf8   :  { %v3796_v20 = vmul.f32 1e+30, %v2922_v4 }
  0xf9   :  { %v3757_v54 = vpop.permute.xlu0 %253 }
  0xfa   :  { %4601 = vst [vmem:[#allocation28_spill] sm:$0xff] %v3757_v54  ;;  %v2923_v6 = vadd.f32 -1.0, %v3757_v54  ;;  %4603 = vst [vmem:[#allocation30_spill] sm:$0xff] %v3796_v20 }
  0xfc   :  { %v3798_v21 = vmul.f32 1e+30, %v2923_v6  ;;  %v2936_v6 = vld [vmem:[%s3544_s29 + $0x1] ss:$0 sm:$0xff]  ;;  %s3503_s29 = smov 96  }
  0xfd   :  { %v3761_v56 = vpop.permute.xlu0 %204 }
  0xfe   :  { %v2913_v12 = vadd.f32 -1.0, %v3761_v56  ;;  %4604 = vst [vmem:[#allocation31_spill] sm:$0xff] %v3798_v21 }
 0x100   :  { %v3800_v29 = vmul.f32 1e+30, %v2913_v12 }
 0x101   :  { %v3765_v58 = vpop.permute.xlu0 %242 }
 0x105   :  { %v3782_v9 = vpop.permute.xlu0 %257 }
 0x106   :  { %v2924_v59 = vadd.f32 -1.0, %v3782_v9 }
 0x109   :  { %v3807_v60 = vpop.permute.xlu0 %261 }
 0x10a   :  { %v2925_v12 = vadd.f32 -1.0, %v3807_v60 }
 0x117   :  { %v3144_v32 = vpop.f32.mrb[0].mxu0 }
 0x118   :  { %v347_v33 = vpop.f32.mrb[1].mxu0 }
 0x119   :  { %v3145_v34 = vpop.f32.mrb[2].mxu0 }
 0x11a   :  { %v364_v35 = vpack.c.bf16 %v3145_v34, %v3144_v32  ;;  %v350_v36 = vpop.f32.mrb[3].mxu0  ;;  %v2910_v32 = vadd.f32 -1.0, %v3763_v57 }
 0x11b   :  { %v363_v37 = vpack.c.bf16 %v350_v36, %v347_v33 }
 0x11d   :  { %3154 = vmatprep.mubr.msk.bf16.mxu1 %vm4561_vm2, %v363_v37 }
 0x11e   :  { %3155 = vmatmul.mubr.msk.bf16.vlgmr.msra.gmra.mrb[0].mxu1 %vm4561_vm2, %v364_v35  ;;  %v3803_v35 = vpop.permute.xlu1 %230 }
 0x11f   :  { %3170 = vmatprep.mubr.msk.bf16.mxu1 %vm149_vm0, %v3681_v5  ;;  %v3150_v38 = vpop.f32.mrb[4].mxu0  ;;  %v2918_v1 = vadd.f32 -1.0, %v3803_v35 }
 0x120   :  { %v411_v39 = vpop.f32.mrb[5].mxu0 }
 0x121   :  { %v3151_v40 = vpop.f32.mrb[6].mxu0 }
 0x122   :  { %v414_v41 = vpop.f32.mrb[7].mxu0 }
 0x1f1   :  { %v3156_v14 = vpop.f32.mrb[0].mxu1 }
 0x1f2   :  { %v478_v18 = vadd.f32 %v3156_v14, %v3150_v38  ;;  %v469_v19 = vpop.f32.mrb[1].mxu1  ;;  %v2921_v38 = vadd.f32 -1.0, %v3765_v58 }
 0x1f3   :  { %v470_v25 = vadd.f32 %v469_v19, %v411_v39  ;;  %v3157_v27 = vpop.f32.mrb[2].mxu1 }
 0x1f4   :  { %v493_v31 = vadd.f32 %v2934_v15, %v478_v18  ;;  %v481_v33 = vadd.f32 %v3157_v27, %v3151_v40  ;;  %v472_v34 = vpop.f32.mrb[3].mxu1  ;;  %v3814_v27 = vmul.f32 1e+30, %v2910_v32 }
 0x1f5   :  { %v491_v36 = vadd.f32 %v2934_v15, %v470_v25  ;;  %v473_v37 = vadd.f32 %v472_v34, %v414_v41  ;;  %v3816_v34 = vmul.f32 1e+30, %v2921_v38 }
 0x1f6   :  { %vm497_vm4 = vcmp.gt.f32.partialorder %v493_v31, 0.0  ;;  %v501_v39 = vmul.f32 0.01, %v493_v31  ;;  %v494_v62 = vadd.f32 %v2934_v15, %v481_v33 }
 0x1f7   :  { %vm495_vm5 = vcmp.gt.f32.partialorder %v491_v36, 0.0  ;;  %v499_v40 = vmul.f32 0.01, %v491_v36  ;;  %v492_v0 = vadd.f32 %v2934_v15, %v473_v37  ;;  %4605 = vst [vmem:[#allocation32_spill] sm:$0xff] %v3816_v34 }
 0x1f8   :  { %v505_v4 = vsel %vm497_vm4, %v493_v31, %v501_v39  ;;  %vm498_vm6 = vcmp.gt.f32.partialorder %v494_v62, 0.0  ;;  %v502_v41 = vmul.f32 0.01, %v494_v62  ;;  %v3820_v31 = vmul.f32 1e+30, %v2924_v59 }
 0x1f9   :  { %v514_v14 = vmul.f32 %v2935_v61, %v505_v4  ;;  %v503_v18 = vsel %vm495_vm5, %v491_v36, %v499_v40  ;;  %vm496_vm7 = vcmp.gt.f32.partialorder %v492_v0, 0.0  ;;  %v500_v19 = vmul.f32 0.01, %v492_v0 }
 0x1fa   :  { %v512_v25 = vmul.f32 %v2935_v61, %v503_v18  ;;  %v506_v33 = vsel %vm498_vm6, %v494_v62, %v502_v41  ;;  %4606 = vst [vmem:[#allocation33_spill] sm:$0xff] %v3820_v31  ;;  %v3826_v36 = vmul.f32 1e+30, %v2918_v1  ;;  %v3834_v62 = vmul.f32 1e+30, %v2925_v12 }
 0x1fb   :  { %v3818_v42 = vadd.f32 %v2936_v6, %v514_v14  ;;  %v515_v15 = vmul.f32 %v2935_v61, %v506_v33  ;;  %v504_v37 = vsel %vm496_vm7, %v492_v0, %v500_v19  ;;  %vm162_vm4 = vcmp.gt.f32.partialorder %v3735_v43, 0.0 }
 0x1fc   :  { %v3822_v39 = vadd.f32 %v2936_v6, %v512_v25  ;;  %v513_v30 = vmul.f32 %v2935_v61, %v504_v37  ;;  %4607 = vst [vmem:[#allocation34_spill] sm:$0xff] %v3834_v62  ;;  %vm165_vm5 = vcmp.gt.f32.partialorder %v3755_v53, 0.0  ;;  %vm163_vm6 = vcmp.gt.f32.partialorder %v3737_v44, 0.0  ;;  %v3383_v44 = vld [vmem:[%s3574_s30] sm:$0xff]  }
 0x1fd   :  { %v577_v32 = vmul.f32 %v3818_v42, %v3741_v46  ;;  %v3830_v40 = vadd.f32 %v2936_v6, %v515_v15  ;;  %v573_v38 = vmul.f32 %v3818_v42, %v3745_v48  ;;  %v585_v12 = vmul.f32 %v3818_v42, %v3782_v9 }
 0x1fe   :  { %v575_v59 = vmul.f32 %v3822_v39, %v3739_v45  ;;  %v571_v61 = vmul.f32 %v3822_v39, %v3763_v57  ;;  %v3840_v63 = vadd.f32 %v2936_v6, %v513_v30  ;;  %v583_v0 = vmul.f32 %v3822_v39, %v3753_v52 }
 0x1ff   :  { %v582_v1 = vmul.f32 %v3830_v40, %v3765_v58  ;;  %v574_v4 = vmul.f32 %v3830_v40, %v3761_v56  ;;  %v589_v41 = vadd.f32 %v573_v38, %v3789_v13  ;;  %v578_v30 = vmul.f32 %v3830_v40, %v3747_v49 }
 0x200   :  { %v587_v14 = vadd.f32 %v571_v61, %v3814_v27  ;;  %v576_v6 = vmul.f32 %v3840_v63, %v3759_v55  ;;  %v572_v18 = vmul.f32 %v3840_v63, %v3774_v2  ;;  %v591_v19 = vadd.f32 %v575_v59, %v3776_v3 }
 0x201   :  { %v598_v25 = vadd.f32 %v582_v1, %v3816_v34  ;;  %v590_v33 = vadd.f32 %v574_v4, %v3800_v29  ;;  %v584_v15 = vmul.f32 %v3840_v63, %v3757_v54  ;;  %v606_v61 = vsel %vm149_vm0, %v589_v41, -inf }
 0x202   :  { %v603_v37 = vsel %vm149_vm0, %v587_v14, -inf  ;;  %v588_v38 = vadd.f32 %v572_v18, %v3824_v28  ;;  %v599_v24 = vadd.f32 %v583_v0, %v3796_v20  ;;  %v592_v26 = vadd.f32 %v576_v6, %v3780_v8 }
 0x203   :  { %v608_v5 = vsel %vm149_vm0, %v590_v33, -inf  ;;  %v600_v59 = vadd.f32 %v584_v15, %v3798_v21  ;;  %v601_v1 = vadd.f32 %v585_v12, %v3820_v31  ;;  %v579_v14 = vmul.f32 %v3822_v39, %v3803_v35 }
 0x204   :  { %v604_v4 = vsel %vm149_vm0, %v588_v38, -inf  ;;  %v642_v34 = vsel %vm149_vm0, %v599_v24, -inf  ;;  %v580_v41 = vmul.f32 %v3840_v63, %v3743_v47  ;;  %v581_v33 = vmul.f32 %v3818_v42, %v3749_v50 }
 0x205   :  { %v605_v18 = vmax.f32 %v603_v37, %v604_v4  ;;  %v643_v0 = vsel %vm149_vm0, %v600_v59, -inf  ;;  %v645_v6 = vsel %vm149_vm0, %v601_v1, -inf  ;;  %v595_v12 = vadd.f32 %v579_v14, %v3826_v36 }
 0x206   :  { %v644_v15 = vmax.f32 %v642_v34, %v643_v0  ;;  %v596_v38 = vadd.f32 %v580_v41, %v3786_v11  ;;  %v586_v24 = vmul.f32 %v3830_v40, %v3807_v60  ;;  %v597_v21 = vadd.f32 %v581_v33, %v3794_v17 }
 0x207   :  { %v607_v31 = vmax.f32 %v605_v18, %v606_v61  ;;  %v3888_v37 = vpack.c.bf16 %v3840_v63, %v3822_v39  ;;  %v3892_v59 = vpack.c.bf16 %v3830_v40, %v3818_v42  ;;  %v629_v34 = vsel %vm149_vm0, %v595_v12, -inf }
 0x208   :  { %v646_v1 = vmax.f32 %v644_v15, %v645_v6  ;;  %v630_v4 = vsel %vm149_vm0, %v596_v38, -inf  ;;  %v602_v14 = vadd.f32 %v586_v24, %v3834_v62  ;;  %v632_v18 = vsel %vm149_vm0, %v597_v21, -inf  ;;  %v3377_v38 = vld [vmem:[%s3559_s14] sm:$0xff]  }
 0x209   :  { %v609_v41 = vmax.f32 %v607_v31, %v608_v5  ;;  %v631_v61 = vmax.f32 %v629_v34, %v630_v4  ;;  %3159 = vmatpush3.bf16.msra.mxu0 %v3888_v37  ;;  %3166 = vmatprep.subr.bf16.mxu1 %v3888_v37  ;;  %v617_v0 = vsel %vm149_vm0, %v592_v26, -inf  ;;  %v4608_v6 = vmov 0.0  }
 0x20a   :  { %v647_v33 = vsel %vm149_vm0, %v602_v14, -inf  ;;  %3167 = vmatpush3.bf16.msra.mxu1 %v3888_v37  ;;  %3160 = vmatprep.subr.bf16.mxu0 %v4608_v6  ;;  %v593_v15 = vadd.f32 %v577_v32, %v3784_v10  ;;  %v594_v12 = vadd.f32 %v578_v30, %v3792_v16  ;;  %v616_v5 = vsel %vm149_vm0, %v591_v19, -inf }
 0x20b   :  { %v610_v31 = vrot.slane %v609_v41, 4  ;;  %v633_v21 = vmax.f32 %v631_v61, %v632_v18  ;;  %3168 = vmatprep.subr.bf16.mxu1 %v3892_v59  ;;  %v618_v24 = vmax.f32 %v616_v5, %v617_v0  ;;  %v648_v26 = vmax.f32 %v646_v1, %v647_v33  ;;  %v3378_v61 = vld [vmem:[%s3559_s14 + $0x8] sm:$0xff]   ;;  %s4635_s14 = sld [smem:[#allocation18_spill]] }
 0x20c   :  { %v634_v34 = vsel %vm149_vm0, %v598_v25, -inf  ;;  %v619_v4 = vsel %vm149_vm0, %v593_v15, -inf  ;;  %v621_v19 = vsel %vm149_vm0, %v594_v12, -inf }
 0x20d   :  { %v611_v14 = vmax.f32 %v609_v41, %v610_v31  ;;  %3161 = vmatpush3.bf16.msra.mxu0 %v3892_v59  ;;  %v620_v32 = vmax.f32 %v618_v24, %v619_v4  ;;  %v635_v62 = vmax.f32 %v633_v21, %v634_v34  ;;  %v649_v30 = vrot.slane %v648_v26, 4 }
 0x20e   :  { %3169 = vmatpush3.bf16.msra.mxu1 %v3892_v59 }
 0x20f   :  { %3182 = vmatprep.subr.bf16.mxu1 %v3377_v38  ;;  %v622_v18 = vmax.f32 %v620_v32, %v621_v19  ;;  %v636_v11 = vrot.slane %v635_v62, 4  ;;  %v650_v0 = vmax.f32 %v648_v26, %v649_v30  ;;  %v612_v25 = vrot.slane %v611_v14, 2 }
 0x210   :  { %3163 = vmatmul.mubr.msk.bf16.vlgmr.msra.gmra.mrb[8].mxu0 %vm149_vm0, %v3707_v22 }
 0x211   :  { %3171 = vmatmul.mubr.msk.bf16.vlgmr.msra.gmra.mrb[4].mxu1 %vm149_vm0, %v3684_v7  ;;  %v623_v1 = vrot.slane %v622_v18, 4  ;;  %v637_v41 = vmax.f32 %v635_v62, %v636_v11  ;;  %v651_v33 = vrot.slane %v650_v0, 2  ;;  %v613_v5 = vmax.f32 %v611_v14, %v612_v25 }
 0x212   :  { %3183 = vmatpush3.bf16.msra.mxu1 %v3377_v38  ;;  %3186 = vmatprep.mubr.msk.bf16.mxu1 %vm149_vm0, %v3888_v37 }
 0x213   :  { %3184 = vmatprep.subr.bf16.mxu1 %v3378_v61  ;;  %v624_v15 = vmax.f32 %v622_v18, %v623_v1  ;;  %v638_v12 = vrot.slane %v637_v41, 2  ;;  %v652_v24 = vmax.f32 %v650_v0, %v651_v33  ;;  %v614_v4 = vrot.slane %v613_v5, 1 }
 0x215   :  { %v625_v31 = vrot.slane %v624_v15, 2  ;;  %v639_v21 = vmax.f32 %v637_v41, %v638_v12  ;;  %v653_v62 = vrot.slane %v652_v24, 1  ;;  %v615_v30 = vmax.f32 %v613_v5, %v614_v4  ;;  %v3379_v12 = vld [vmem:[%s3549_s3] sm:$0xff]   ;;  %v3380_v5 = vld [vmem:[%s3549_s3 + $0x8] sm:$0xff]   ;;  %s4631_s3 = sld [smem:[#allocation14_spill]] }
 0x216   :  { %3185 = vmatpush3.bf16.msra.mxu1 %v3378_v61  ;;  %3174 = vmatprep.subr.bf16.mxu0 %v3379_v12 }
 0x217   :  { %v626_v26 = vmax.f32 %v624_v15, %v625_v31  ;;  %v640_v34 = vrot.slane %v639_v21, 1  ;;  %v654_v19 = vmax.f32 %v652_v24, %v653_v62  ;;  %3175 = vmatpush3.bf16.msra.mxu0 %v3379_v12  ;;  %v3381_v31 = vld [vmem:[%s3579_s6] sm:$0xff]  }
 0x218   :  { %3176 = vmatprep.subr.bf16.mxu0 %v3380_v5  ;;  %v785_v24 = vld [vmem:[%s3554_s8] sm:$0xf]  ;;  %s4634_s8 = sld [smem:[#allocation13_spill]] }
 0x219   :  { %3187 = vmatmul.mubr.msk.bf16.vlgmr.msra.gmra.mrb[8].mxu1 %vm149_vm0, %v3892_v59  ;;  %v627_v11 = vrot.slane %v626_v26, 1  ;;  %v641_v32 = vmax.f32 %v639_v21, %v640_v34  ;;  %v2210_v1 = vrot.slane %v654_v19, 5  ;;  %v180_v21 = vsel %vm179_vm14, %v3710_v23, 0.0  ;;  %3334 = vmatprep.subr.msk.bf16.mxu1 %vm373_vm1, %v785_v24  ;;  %v3429_v34 = vpop.eup %3428 }
 0x21a   :  { %181 = vadd.xlane.f32.xlu1 %v180_v21  ;;  %v3431_v23 = vpop.eup %3430 }
 0x21b   :  { %v628_v38 = vmax.f32 %v626_v26, %v627_v11  ;;  %v2205_v18 = vrot.slane %v641_v32, 6  ;;  %3177 = vmatpush3.bf16.msra.mxu0 %v3380_v5  ;;  %v866_v26 = vsel %vm373_vm1, %v785_v24, 0  ;;  %v3433_v4 = vpop.eup %3432  ;;  %v3951_v51 = vsel %vm162_vm4, %v3431_v23, 0.0 }
 0x21c   :  { %3196 = vmatprep.subr.bf16.mxu0 %v3381_v31  ;;  %3191 = vmatpush3.bf16.msra.mxu1 %v866_v26  ;;  %v3435_v62 = vpop.eup %3434  ;;  %4610 = vst [vmem:[#allocation36_spill] sm:$0xff] %v3951_v51  ;;  %v3954_v53 = vsel %vm165_vm5, %v3433_v4, 0.0  ;;  %v3382_v4 = vld [vmem:[%s3579_s6 + $0x8] sm:$0xff]   ;;  %vm4562_vm4 = vcmask 781824   ;;  %s4645_s6 = sld [smem:[#allocation11_spill]] }
 0x21d   :  { %v2200_v14 = vrot.slane %v628_v38, 7  ;;  %3212 = vmatprep.subr.bf16.mxu1 %v4608_v6  ;;  %v3947_v38 = vsel %vm164_vm15, %v3429_v34, 0.0  ;;  %4611 = vst [vmem:[#allocation37_spill] sm:$0xff] %v3954_v53  ;;  %vm2221_vm15 = vcmask 519424  }
 0x21e   :  { %4609 = vst [vmem:[#allocation35_spill] sm:$0xff] %v3947_v38 }
 0x21f   :  { %v2202_v61 = vsel %vm2201_vm8, %v2200_v14, %v615_v30 }
 0x220   :  { %v2204_v0 = vsel %vm2203_vm9, %v2200_v14, %v2202_v61 }
 0x221   :  { %v2207_v25 = vsel %vm2206_vm10, %v2205_v18, %v2204_v0 }
 0x222   :  { %v2209_v41 = vsel %vm2208_vm11, %v2205_v18, %v2207_v25 }
 0x223   :  { %v2212_v33 = vsel %vm2211_vm12, %v2210_v1, %v2209_v41  ;;  %v3959_v41 = vsel %vm163_vm6, %v3435_v62, 0.0 }
 0x224   :  { %v2214_v15 = vsel %vm2213_vm13, %v2210_v1, %v2212_v33  ;;  %4612 = vst [vmem:[#allocation38_spill] sm:$0xff] %v3959_v41 }
 0x225   :  { %2216 = vst.msk [vmem:[#allocation2] sm:$0xf] %vm179_vm14, %v2214_v15 }
 0x2e3   :  { %v564_v11 = vpop.f32.mrb[8].mxu0 }
 0x2e4   :  { %v3172_v32 = vpop.f32.mrb[4].mxu1  ;;  %v3164_v30 = vpop.f32.mrb[9].mxu0  ;;  %2224 = vrot.lane.b32.xlu0 %v564_v11, %s3501_s0 }
 0x2e5   :  { %v706_v19 = vmul.f32 %v3172_v32, %v3947_v38  ;;  %v689_v14 = vpop.f32.mrb[5].mxu1  ;;  %v567_v43 = vpop.f32.mrb[10].mxu0 }
 0x2e6   :  { %v704_v61 = vmul.f32 %v689_v14, %v3951_v51  ;;  %v3173_v18 = vpop.f32.mrb[6].mxu1  ;;  %v3165_v0 = vpop.f32.mrb[11].mxu0 }
 0x2e7   :  { %v707_v25 = vmul.f32 %v3173_v18, %v3954_v53  ;;  %v963_v1 = vpack.c.bf16 %v3173_v18, %v3172_v32  ;;  %v692_v33 = vpop.f32.mrb[7].mxu1  ;;  %v710_v5 = vsub.f32 %v706_v19, %v3818_v42  ;;  %v3384_v42 = vld [vmem:[%s3574_s30 + $0x8] sm:$0xff]   ;;  %v4618_v53 = vld [vmem:[#allocation33_spill] sm:$0xff]  ;;  %s4636_s30 = sld [smem:[#allocation17_spill]] }
 0x2e8   :  { %v705_v15 = vmul.f32 %v692_v33, %v3959_v41  ;;  %v962_v12 = vpack.c.bf16 %v692_v33, %v689_v14  ;;  %v708_v24 = vsub.f32 %v704_v61, %v3822_v39  ;;  %v182_v39 = vpop.xlane.xlu1 %181 }
 0x2e9   :  { %v711_v21 = vsub.f32 %v707_v25, %v3830_v40  ;;  %3436 = vrcp.f32 %v182_v39  ;;  %vm183_vm7 = vcmp.gt.f32.partialorder %v182_v39, 0.0 }
 0x2ea   :  { %v709_v26 = vsub.f32 %v705_v15, %v3840_v63  ;;  %v2962_v15 = vld [vmem:[%s3589_s20] ss:$0 sm:$0xff] }
 0x2eb   :  { %v717_v34 = vpack.c.bf16 %v711_v21, %v710_v5 }
 0x2ec   :  { %v716_v23 = vpack.c.bf16 %v709_v26, %v708_v24 }
 0x2ee   :  { %3178 = vmatprep.mubr.msk.bf16.mxu0 %vm149_vm0, %v716_v23 }
 0x2ef   :  { %3179 = vmatmul.mubr.msk.bf16.vlgmr.msra.gmra.mrb[12].mxu0 %vm149_vm0, %v717_v34  ;;  %v2963_v34 = vld [vmem:[%s3589_s20 + $0x1] ss:$0 sm:$0xff]  ;;  %s4647_s20 = sld [smem:[#allocation15_spill]] }
 0x2f0   :  { %3197 = vmatpush3.bf16.msra.mxu0 %v3381_v31  ;;  %3200 = vmatprep.mubr.msk.bf16.mxu0 %vm149_vm0, %v3888_v37 }
 0x2f1   :  { %3198 = vmatprep.subr.bf16.mxu0 %v3382_v4 }
 0x2f3   :  { %v3437_v40 = vpop.eup %3436 }
 0x2f4   :  { %3199 = vmatpush3.bf16.msra.mxu0 %v3382_v4  ;;  %v3980_v63 = vsel %vm183_vm7, %v3437_v40, 0.0 }
 0x2f5   :  { %3204 = vmatprep.subr.bf16.mxu0 %v3383_v44  ;;  %4613 = vst [vmem:[#allocation39_spill] sm:$0xff] %v3980_v63  ;;  %v570_v37 = vmul.f32 %v564_v11, %v3980_v63  ;;  %v2961_v11 = vld [vmem:[%s3584_s12] ss:$0 sm:$0xff]  ;;  %s4646_s12 = sld [smem:[#allocation12_spill]] }
 0x2f7   :  { %3201 = vmatmul.mubr.msk.bf16.vlgmr.msra.gmra.mrb[16].mxu0 %vm149_vm0, %v3892_v59  ;;  %2218 = vrot.lane.b32.xlu1 %v570_v37, %s3502_s5 }
 0x2f8   :  { %3208 = vmatprep.mubr.msk.bf16.mxu0 %vm149_vm0, %v962_v12  ;;  %3205 = vmatpush3.bf16.msra.mxu0 %v3383_v44 }
 0x2f9   :  { %3206 = vmatprep.subr.bf16.mxu0 %v3384_v42 }
 0x2fc   :  { %3207 = vmatpush3.bf16.msra.mxu0 %v3384_v42 }
 0x2fd   :  { %3220 = vmatprep.subr.bf16.mxu0 %v4608_v6 }
 0x303   :  { %3209 = vmatmul.mubr.msk.bf16.vlgmr.msra.gmra.mrb[16].mxu0 %vm149_vm0, %v963_v1 }
 0x304   :  { %3224 = vmatprep.mubr.msk.bf16.mxu0 %vm4551_vm3, %v4608_v6 }
 0x356   :  { %v2225_v59 = vpop.permute.xlu0 %2224 }
 0x369   :  { %v2219_v31 = vpop.permute.xlu1 %2218 }
 0x36a   :  { %2222 = vst.msk [vmem:[#allocation2] sm:$0xf] %vm2221_vm15, %v2219_v31 }
 0x36b   :  { %2228 = vst.msk [vmem:[#allocation2] sm:$0xf] %vm4562_vm4, %v2225_v59 }
 0x3c2   :  { %v3180_v62 = vpop.f32.mrb[12].mxu0 }
 0x3c3   :  { %v770_v32 = vpop.f32.mrb[13].mxu0 }
 0x3c4   :  { %v3181_v30 = vpop.f32.mrb[14].mxu0 }
 0x3c5   :  { %v787_v19 = vpack.c.bf16 %v3181_v30, %v3180_v62  ;;  %v773_v14 = vpop.f32.mrb[15].mxu0 }
 0x3c6   :  { %v786_v43 = vpack.c.bf16 %v773_v14, %v770_v32 }
 0x3c8   :  { %3192 = vmatprep.mubr.msk.bf16.mxu1 %vm4561_vm2, %v786_v43 }
 0x3c9   :  { %3193 = vmatmul.mubr.msk.bf16.vlgmr.msra.gmra.mrb[8].mxu1 %vm4561_vm2, %v787_v19 }
 0x3ca   :  { %3216 = vmatprep.mubr.msk.bf16.mxu1 %vm4551_vm3, %v4608_v6 }
 0x3d6   :  { %v3210_v61 = vpop.f32.mrb[16].mxu0 }
 0x3d7   :  { %v1105_v18 = vadd.f32 %v3210_v61, %v2961_v11  ;;  %v1081_v0 = vpop.f32.mrb[17].mxu0 }
 0x3d8   :  { %v1103_v25 = vadd.f32 %v2961_v11, %v1081_v0  ;;  %v3211_v1 = vpop.f32.mrb[18].mxu0 }
 0x3d9   :  { %vm1109_vm5 = vcmp.gt.f32.partialorder %v1105_v18, 0.0  ;;  %v1113_v33 = vmul.f32 0.01, %v1105_v18  ;;  %v1106_v12 = vadd.f32 %v3211_v1, %v2961_v11  ;;  %v1084_v5 = vpop.f32.mrb[19].mxu0 }
 0x3da   :  { %vm1107_vm6 = vcmp.gt.f32.partialorder %v1103_v25, 0.0  ;;  %v1111_v21 = vmul.f32 0.01, %v1103_v25  ;;  %v1104_v24 = vadd.f32 %v2961_v11, %v1084_v5 }
 0x3db   :  { %v1117_v26 = vsel %vm1109_vm5, %v1105_v18, %v1113_v33  ;;  %vm1110_vm7 = vcmp.gt.f32.partialorder %v1106_v12, 0.0  ;;  %v1114_v23 = vmul.f32 0.01, %v1106_v12 }
 0x3dc   :  { %v1126_v4 = vmul.f32 %v2962_v15, %v1117_v26  ;;  %v1115_v44 = vsel %vm1107_vm6, %v1103_v25, %v1111_v21  ;;  %vm1108_vm3 = vcmp.gt.f32.partialorder %v1104_v24, 0.0  ;;  %v1112_v42 = vmul.f32 0.01, %v1104_v24 }
 0x3dd   :  { %v1124_v39 = vmul.f32 %v2962_v15, %v1115_v44  ;;  %v1118_v40 = vsel %vm1110_vm7, %v1106_v12, %v1114_v23 }
 0x3de   :  { %v1135_v37 = vadd.f32 %v2963_v34, %v1126_v4  ;;  %v1127_v59 = vmul.f32 %v2962_v15, %v1118_v40  ;;  %v1116_v62 = vsel %vm1108_vm3, %v1104_v24, %v1112_v42 }
 0x3df   :  { %v1133_v31 = vadd.f32 %v2963_v34, %v1124_v39  ;;  %v1125_v18 = vmul.f32 %v2962_v15, %v1116_v62 }
 0x3e0   :  { %v1309_v32 = vmul.f32 %v1135_v37, %v3745_v48  ;;  %v1313_v30 = vmul.f32 %v1135_v37, %v3741_v46  ;;  %v1317_v11 = vmul.f32 %v1135_v37, %v3749_v50  ;;  %v1136_v61 = vadd.f32 %v2963_v34, %v1127_v59 }
 0x3e1   :  { %v1307_v19 = vmul.f32 %v1133_v31, %v3763_v57  ;;  %v1311_v14 = vmul.f32 %v1133_v31, %v3739_v45  ;;  %v1315_v43 = vmul.f32 %v1133_v31, %v3803_v35  ;;  %v1319_v0 = vmul.f32 %v1133_v31, %v3753_v52 }
 0x3e2   :  { %v1321_v33 = vmul.f32 %v1135_v37, %v3782_v9  ;;  %v1325_v12 = vadd.f32 %v1309_v32, %v3789_v13  ;;  %v1329_v5 = vadd.f32 %v1313_v30, %v3784_v10  ;;  %v1333_v24 = vadd.f32 %v1317_v11, %v3794_v17 }
 0x3e3   :  { %v1323_v25 = vadd.f32 %v1307_v19, %v3814_v27  ;;  %v1327_v1 = vadd.f32 %v1311_v14, %v3776_v3  ;;  %v1331_v21 = vadd.f32 %v1315_v43, %v3826_v36  ;;  %v1310_v26 = vmul.f32 %v1136_v61, %v3761_v56 }
 0x3e4   :  { %v1314_v15 = vmul.f32 %v1136_v61, %v3747_v49  ;;  %v1134_v23 = vadd.f32 %v2963_v34, %v1125_v18  ;;  %v1335_v4 = vadd.f32 %v1319_v0, %v3796_v20  ;;  %v1318_v42 = vmul.f32 %v1136_v61, %v3765_v58  ;;  %v4615_v18 = vld [vmem:[#allocation32_spill] sm:$0xff] }
 0x3e5   :  { %v1339_v44 = vsel %vm149_vm0, %v1323_v25, -inf  ;;  %v4012_v39 = vpack.c.bf16 %v1136_v61, %v1135_v37  ;;  %v1352_v40 = vsel %vm149_vm0, %v1327_v1, -inf  ;;  %v1322_v59 = vmul.f32 %v1136_v61, %v3807_v60  ;;  %v4616_v25 = vld [vmem:[#allocation29_spill] sm:$0xff] }
 0x3e6   :  { %v1308_v62 = vmul.f32 %v1134_v23, %v3774_v2  ;;  %v1312_v32 = vmul.f32 %v1134_v23, %v3759_v55  ;;  %v1365_v30 = vsel %vm149_vm0, %v1331_v21, -inf  ;;  %v1316_v34 = vmul.f32 %v1134_v23, %v3743_v47  ;;  %v4617_v21 = vld [vmem:[#allocation31_spill] sm:$0xff] }
 0x3e7   :  { %v1320_v19 = vmul.f32 %v1134_v23, %v3757_v54  ;;  %v4021_v14 = vpack.c.bf16 %v1134_v23, %v1133_v31  ;;  %v1326_v37 = vadd.f32 %v1310_v26, %v3800_v29  ;;  %v1330_v43 = vadd.f32 %v1314_v15, %v3792_v16  ;;  %v3385_v15 = vld [vmem:[%s4614_s9] sm:$0xff]  }
 0x3e8   :  { %v1324_v11 = vadd.f32 %v1308_v62, %v3824_v28  ;;  %v1328_v61 = vadd.f32 %v1312_v32, %v3780_v8  ;;  %v1334_v0 = vadd.f32 %v1318_v42, %v4615_v18  ;;  %v1332_v1 = vadd.f32 %v1316_v34, %v4616_v25  ;;  %v4619_v23 = vld [vmem:[#allocation34_spill] sm:$0xff] }
 0x3e9   :  { %v1336_v41 = vadd.f32 %v1320_v19, %v4617_v21  ;;  %3221 = vmatpush3.bf16.msra.mxu0 %v4021_v14  ;;  %v1337_v51 = vadd.f32 %v1321_v33, %v4618_v53  ;;  %v1338_v62 = vadd.f32 %v1322_v59, %v4619_v23  ;;  %v1378_v32 = vsel %vm149_vm0, %v1335_v4, -inf }
 0x3ea   :  { %v1340_v31 = vsel %vm149_vm0, %v1324_v11, -inf  ;;  %v1353_v26 = vsel %vm149_vm0, %v1328_v61, -inf  ;;  %3222 = vmatprep.subr.bf16.mxu0 %v4608_v6  ;;  %v1366_v19 = vsel %vm149_vm0, %v1332_v1, -inf  ;;  %v1342_v33 = vsel %vm149_vm0, %v1325_v12, -inf }
 0x3eb   :  { %v1341_v42 = vmax.f32 %v1339_v44, %v1340_v31  ;;  %v1354_v34 = vmax.f32 %v1352_v40, %v1353_v26  ;;  %v1379_v38 = vsel %vm149_vm0, %v1336_v41, -inf  ;;  %v1355_v11 = vsel %vm149_vm0, %v1329_v5, -inf  ;;  %v3386_v41 = vld [vmem:[%s4614_s9 + $0x8] sm:$0xff]  }
 0x3ec   :  { %v1367_v63 = vmax.f32 %v1365_v30, %v1366_v19  ;;  %v1380_v61 = vmax.f32 %v1378_v32, %v1379_v38  ;;  %v1368_v59 = vsel %vm149_vm0, %v1333_v24, -inf  ;;  %v1381_v4 = vsel %vm149_vm0, %v1337_v51, -inf }
 0x3ed   :  { %v1343_v7 = vmax.f32 %v1341_v42, %v1342_v33  ;;  %3223 = vmatpush3.bf16.msra.mxu0 %v4012_v39  ;;  %v1356_v53 = vmax.f32 %v1354_v34, %v1355_v11  ;;  %v1344_v44 = vsel %vm149_vm0, %v1326_v37, -inf  ;;  %v1357_v40 = vsel %vm149_vm0, %v1330_v43, -inf }
 0x3ee   :  { %3236 = vmatprep.subr.bf16.mxu0 %v3385_v15  ;;  %v1369_v1 = vmax.f32 %v1367_v63, %v1368_v59  ;;  %v1382_v12 = vmax.f32 %v1380_v61, %v1381_v4  ;;  %v1370_v38 = vsel %vm149_vm0, %v1334_v0, -inf  ;;  %v1383_v30 = vsel %vm149_vm0, %v1338_v62, -inf }
 0x3ef   :  { %v1345_v31 = vmax.f32 %v1343_v7, %v1344_v44  ;;  %v1358_v5 = vmax.f32 %v1356_v53, %v1357_v40 }
 0x3f0   :  { %3225 = vmatmul.mubr.msk.bf16.vlgmr.msra.gmra.mrb[20].mxu0 %vm149_vm0, %v3707_v22  ;;  %v1371_v24 = vmax.f32 %v1369_v1, %v1370_v38  ;;  %v1384_v26 = vmax.f32 %v1382_v12, %v1383_v30 }
 0x3f1   :  { %3237 = vmatpush3.bf16.msra.mxu0 %v3385_v15  ;;  %v1346_v51 = vrot.slane %v1345_v31, 4  ;;  %v1359_v37 = vrot.slane %v1358_v5, 4 }
 0x3f2   :  { %3238 = vmatprep.subr.bf16.mxu0 %v3386_v41  ;;  %v1372_v43 = vrot.slane %v1371_v24, 4  ;;  %v1385_v32 = vrot.slane %v1384_v26, 4 }
 0x3f3   :  { %v1347_v42 = vmax.f32 %v1345_v31, %v1346_v51  ;;  %v1360_v63 = vmax.f32 %v1358_v5, %v1359_v37 }
 0x3f4   :  { %v1373_v34 = vmax.f32 %v1371_v24, %v1372_v43  ;;  %v1386_v7 = vmax.f32 %v1384_v26, %v1385_v32  ;;  %v2950_v32 = vld [vmem:[%s4620_s17] ss:$0 sm:$0xff] }
 0x3f5   :  { %3239 = vmatpush3.bf16.msra.mxu0 %v3386_v41  ;;  %v1348_v53 = vrot.slane %v1347_v42, 2  ;;  %v1361_v0 = vrot.slane %v1360_v63, 2 }
 0x3f6   :  { %3258 = vmatprep.subr.bf16.mxu0 %v4021_v14  ;;  %v1374_v62 = vrot.slane %v1373_v34, 2  ;;  %v1387_v19 = vrot.slane %v1386_v7, 2 }
 0x3f7   :  { %v1349_v22 = vmax.f32 %v1347_v42, %v1348_v53  ;;  %v1362_v33 = vmax.f32 %v1360_v63, %v1361_v0 }
 0x3f8   :  { %v1375_v11 = vmax.f32 %v1373_v34, %v1374_v62  ;;  %v1388_v15 = vmax.f32 %v1386_v7, %v1387_v19  ;;  %v2951_v62 = vld [vmem:[%s4621_s21] ss:$0 sm:$0xff] }
 0x3f9   :  { %v1350_v61 = vrot.slane %v1349_v22, 1  ;;  %v1363_v59 = vrot.slane %v1362_v33, 1 }
 0x3fa   :  { %v1376_v4 = vrot.slane %v1375_v11, 1  ;;  %v1389_v44 = vrot.slane %v1388_v15, 1 }
 0x3fb   :  { %v1364_v40 = vmax.f32 %v1362_v33, %v1363_v59  ;;  %v1351_v12 = vmax.f32 %v1349_v22, %v1350_v61  ;;  %v2952_v61 = vld [vmem:[%s4621_s21 + $0x1] ss:$0 sm:$0xff] }
 0x3fc   :  { %v1377_v1 = vmax.f32 %v1375_v11, %v1376_v4  ;;  %v1390_v31 = vmax.f32 %v1388_v15, %v1389_v44 }
 0x3fd   :  { %v2251_v41 = vrot.slane %v1364_v40, 7 }
 0x3fe   :  { %v2254_v38 = vrot.slane %v1377_v1, 6  ;;  %v2257_v26 = vrot.slane %v1390_v31, 5 }
 0x3ff   :  { %v2252_v5 = vsel %vm2201_vm8, %v2251_v41, %v1351_v12 }
 0x400   :  { %v2253_v30 = vsel %vm2203_vm9, %v2251_v41, %v2252_v5 }
 0x401   :  { %v2255_v24 = vsel %vm2206_vm10, %v2254_v38, %v2253_v30 }
 0x402   :  { %v2256_v51 = vsel %vm2208_vm11, %v2254_v38, %v2255_v24 }
 0x403   :  { %v2258_v37 = vsel %vm2211_vm12, %v2257_v26, %v2256_v51 }
 0x404   :  { %v2259_v43 = vsel %vm2213_vm13, %v2257_v26, %v2258_v37 }
 0x405   :  { %2261 = vst.msk [vmem:[#allocation2 + $0x4] sm:$0xf] %vm179_vm14, %v2259_v43 }
 0x49c   :  { %v3194_v42 = vpop.f32.mrb[8].mxu1 }
 0x49d   :  { %v926_v63 = vadd.f32 %v3194_v42, %v2950_v32  ;;  %v902_v34 = vpop.f32.mrb[9].mxu1 }
 0x49e   :  { %v924_v7 = vadd.f32 %v2950_v32, %v902_v34  ;;  %v3195_v53 = vpop.f32.mrb[10].mxu1 }
 0x49f   :  { %vm930_vm3 = vcmp.gt.f32.partialorder %v926_v63, 0.0  ;;  %v934_v0 = vmul.f32 0.01, %v926_v63  ;;  %v927_v19 = vadd.f32 %v3195_v53, %v2950_v32  ;;  %v905_v22 = vpop.f32.mrb[11].mxu1 }
 0x4a0   :  { %vm928_vm5 = vcmp.gt.f32.partialorder %v924_v7, 0.0  ;;  %v932_v33 = vmul.f32 0.01, %v924_v7  ;;  %v925_v11 = vadd.f32 %v2950_v32, %v905_v22 }
 0x4a1   :  { %v938_v15 = vsel %vm930_vm3, %v926_v63, %v934_v0  ;;  %vm931_vm6 = vcmp.gt.f32.partialorder %v927_v19, 0.0  ;;  %v935_v59 = vmul.f32 0.01, %v927_v19 }
 0x4a2   :  { %v947_v4 = vmul.f32 %v2951_v62, %v938_v15  ;;  %v936_v44 = vsel %vm928_vm5, %v924_v7, %v932_v33  ;;  %vm929_vm7 = vcmp.gt.f32.partialorder %v925_v11, 0.0  ;;  %v933_v40 = vmul.f32 0.01, %v925_v11 }
 0x4a3   :  { %v945_v1 = vmul.f32 %v2951_v62, %v936_v44  ;;  %v939_v12 = vsel %vm931_vm6, %v927_v19, %v935_v59 }
 0x4a4   :  { %v956_v31 = vadd.f32 %v2952_v61, %v947_v4  ;;  %v948_v41 = vmul.f32 %v2951_v62, %v939_v12  ;;  %v937_v5 = vsel %vm929_vm7, %v925_v11, %v933_v40  ;;  %vm4644_vm7 = vmmov 0  }
 0x4a5   :  { %v954_v38 = vadd.f32 %v2952_v61, %v945_v1  ;;  %v946_v30 = vmul.f32 %v2951_v62, %v937_v5 }
 0x4a6   :  { %v957_v24 = vadd.f32 %v2952_v61, %v948_v41  ;;  %v1397_v26 = vmul.f32 0.01, %v956_v31  ;;  %vm1393_vm3 = vcmp.gt.f32.partialorder %v956_v31, 0.0  ;;  %v1182_v42 = vmul.f32 %v956_v31, %v3745_v48 }
 0x4a7   :  { %v955_v51 = vadd.f32 %v2952_v61, %v946_v30  ;;  %vm1391_vm2 = vcmp.gt.f32.partialorder %v954_v38, 0.0  ;;  %v1395_v37 = vmul.f32 0.01, %v954_v38  ;;  %v1180_v7 = vmul.f32 %v954_v38, %v3763_v57 }
 0x4a8   :  { %v1138_v43 = vpack.c.bf16 %v957_v24, %v956_v31  ;;  %vm1394_vm4 = vcmp.gt.f32.partialorder %v957_v24, 0.0  ;;  %v1398_v32 = vmul.f32 0.01, %v957_v24  ;;  %v4067_v0 = vsel %vm1393_vm3, %v956_v31, %v1397_v26 }
 0x4a9   :  { %v1137_v63 = vpack.c.bf16 %v955_v51, %v954_v38  ;;  %vm1392_vm5 = vcmp.gt.f32.partialorder %v955_v51, 0.0  ;;  %v1396_v34 = vmul.f32 0.01, %v955_v51  ;;  %v4065_v53 = vsel %vm1391_vm2, %v954_v38, %v1395_v37 }
 0x4aa   :  { %v4069_v62 = vsel %vm1394_vm4, %v957_v24, %v1398_v32  ;;  %v1181_v19 = vmul.f32 %v955_v51, %v3774_v2  ;;  %v1183_v11 = vmul.f32 %v957_v24, %v3761_v56  ;;  %v1184_v15 = vmul.f32 %v954_v38, %v3739_v45 }
 0x4ab   :  { %3213 = vmatpush3.bf16.msra.mxu1 %v1137_v63  ;;  %v4072_v22 = vsel %vm1392_vm5, %v955_v51, %v1396_v34  ;;  %v4076_v33 = vpack.c.bf16 %v4069_v62, %v4067_v0  ;;  %v1185_v59 = vmul.f32 %v955_v51, %v3759_v55  ;;  %v1186_v4 = vmul.f32 %v956_v31, %v3741_v46 }
 0x4ac   :  { %3214 = vmatprep.subr.bf16.mxu1 %v4608_v6  ;;  %v4083_v61 = vpack.c.bf16 %v4072_v22, %v4065_v53  ;;  %v1187_v44 = vmul.f32 %v957_v24, %v3747_v49  ;;  %v1188_v40 = vmul.f32 %v954_v38, %v3803_v35  ;;  %v1189_v1 = vmul.f32 %v955_v51, %v3743_v47 }
 0x4ad   :  { %v1190_v12 = vmul.f32 %v956_v31, %v3749_v50  ;;  %v1191_v41 = vmul.f32 %v957_v24, %v3765_v58  ;;  %v1192_v5 = vmul.f32 %v954_v38, %v3753_v52  ;;  %v1193_v30 = vmul.f32 %v955_v51, %v3757_v54 }
 0x4ae   :  { %v1196_v26 = vadd.f32 %v1180_v7, %v3814_v27  ;;  %v1197_v37 = vadd.f32 %v1181_v19, %v3824_v28  ;;  %v1194_v32 = vmul.f32 %v956_v31, %v3782_v9  ;;  %v1195_v63 = vmul.f32 %v957_v24, %v3807_v60  ;;  %v4110_v19 = vld [vmem:[%s3524_s13] sm:$0x3]  ;;  %s4628_s13 = sld [smem:[#allocation9_spill]] }
 0x4af   :  { %3215 = vmatpush3.bf16.msra.mxu1 %v1138_v43  ;;  %v1198_v34 = vadd.f32 %v1182_v42, %v3789_v13  ;;  %v1199_v47 = vadd.f32 %v1183_v11, %v3800_v29  ;;  %v1200_v38 = vadd.f32 %v1184_v15, %v3776_v3  ;;  %v1201_v51 = vadd.f32 %v1185_v59, %v3780_v8 }
 0x4b0   :  { %3228 = vmatprep.subr.bf16.mxu1 %v4083_v61  ;;  %v1202_v7 = vadd.f32 %v1186_v4, %v3784_v10  ;;  %v1203_v54 = vadd.f32 %v1187_v44, %v3792_v16  ;;  %v1204_v43 = vadd.f32 %v1188_v40, %v3826_v36  ;;  %v1205_v31 = vadd.f32 %v1189_v1, %v4616_v25  ;;  %v4624_v44 = vld [vmem:[#allocation21_spill] sm:$0xff] }
 0x4b1   :  { %v1206_v24 = vadd.f32 %v1190_v12, %v3794_v17  ;;  %v1207_v42 = vadd.f32 %v1191_v41, %v4615_v18  ;;  %4623 = vst [vmem:[#allocation29_spill] sm:$0xff] %v4110_v19  ;;  %v1208_v11 = vadd.f32 %v1192_v5, %v3796_v20  ;;  %v1209_v15 = vadd.f32 %v1193_v30, %v4617_v21  ;;  %v4625_v40 = vld [vmem:[#allocation33_spill] sm:$0xff]  ;;  %v3387_v18 = vld [vmem:[%s4622_s25] sm:$0xff]  }
 0x4b2   :  { %3217 = vmatmul.mubr.msk.bf16.vlgmr.msra.gmra.mrb[12].mxu1 %vm149_vm0, %v4110_v19  ;;  %v1212_v59 = vsel %vm149_vm0, %v1196_v26, -inf  ;;  %v1213_v4 = vsel %vm149_vm0, %v1197_v37, -inf  ;;  %v1210_v1 = vadd.f32 %v1194_v32, %v4625_v40  ;;  %v1211_v12 = vadd.f32 %v1195_v63, %v4619_v23 }
 0x4b3   :  { %3229 = vmatpush3.bf16.msra.mxu1 %v4083_v61  ;;  %3232 = vmatprep.mubr.msk.bf16.mxu1 %vm149_vm0, %v4624_v44  ;;  %v1214_v41 = vmax.f32 %v1212_v59, %v1213_v4  ;;  %v1215_v5 = vsel %vm149_vm0, %v1198_v34, -inf  ;;  %v1217_v30 = vsel %vm149_vm0, %v1199_v47, -inf  ;;  %v1225_v26 = vsel %vm149_vm0, %v1200_v38, -inf }
 0x4b4   :  { %3230 = vmatprep.subr.bf16.mxu1 %v4076_v33  ;;  %v1226_v37 = vsel %vm149_vm0, %v1201_v51, -inf  ;;  %v1238_v19 = vsel %vm149_vm0, %v1204_v43, -inf  ;;  %v1239_v32 = vsel %vm149_vm0, %v1205_v31, -inf  ;;  %v1228_v63 = vsel %vm149_vm0, %v1202_v7, -inf }
 0x4b5   :  { %v1216_v21 = vmax.f32 %v1214_v41, %v1215_v5  ;;  %v1227_v20 = vmax.f32 %v1225_v26, %v1226_v37  ;;  %v1240_v59 = vmax.f32 %v1238_v19, %v1239_v32  ;;  %v1251_v4 = vsel %vm149_vm0, %v1208_v11, -inf  ;;  %v3388_v41 = vld [vmem:[%s4622_s25 + $0x8] sm:$0xff]  }
 0x4b6   :  { %v1252_v34 = vsel %vm149_vm0, %v1209_v15, -inf  ;;  %v1241_v23 = vsel %vm149_vm0, %v1206_v24, -inf  ;;  %v1230_v43 = vsel %vm149_vm0, %v1203_v54, -inf  ;;  %v1254_v31 = vsel %vm149_vm0, %v1210_v1, -inf  ;;  %v4626_v15 = vld [vmem:[#allocation22_spill] sm:$0xff] }
 0x4b7   :  { %3231 = vmatpush3.bf16.msra.mxu1 %v4076_v33  ;;  %v1218_v47 = vmax.f32 %v1216_v21, %v1217_v30  ;;  %v1229_v38 = vmax.f32 %v1227_v20, %v1228_v63  ;;  %v1253_v51 = vmax.f32 %v1251_v4, %v1252_v34  ;;  %v1242_v5 = vmax.f32 %v1240_v59, %v1241_v23 }
 0x4b8   :  { %3244 = vmatprep.subr.bf16.mxu1 %v3387_v18  ;;  %v1243_v11 = vsel %vm149_vm0, %v1207_v42, -inf  ;;  %v1256_v20 = vsel %vm149_vm0, %v1211_v12, -inf  ;;  %vm2245_vm2 = vcmask 1044224   ;;  %vm4642_vm4 = vcmask 64512  }
 0x4b9   :  { %v1219_v7 = vrot.slane %v1218_v47, 4  ;;  %v1231_v19 = vmax.f32 %v1229_v38, %v1230_v43  ;;  %v1255_v26 = vmax.f32 %v1253_v51, %v1254_v31  ;;  %v1244_v21 = vmax.f32 %v1242_v5, %v1243_v11  ;;  %vm4643_vm6 = vmmov %vm4642_vm4 }
 0x4ba   :  { %3233 = vmatmul.mubr.msk.bf16.vlgmr.msra.gmra.mrb[16].mxu1 %vm149_vm0, %v4626_v15 }
 0x4bb   :  { %3245 = vmatpush3.bf16.msra.mxu1 %v3387_v18  ;;  %3248 = vmatprep.mubr.msk.bf16.mxu1 %vm149_vm0, %v4083_v61  ;;  %v1220_v24 = vmax.f32 %v1218_v47, %v1219_v7  ;;  %v1232_v54 = vrot.slane %v1231_v19, 4  ;;  %v1257_v23 = vmax.f32 %v1255_v26, %v1256_v20  ;;  %v1245_v1 = vrot.slane %v1244_v21, 4 }
 0x4bc   :  { %3246 = vmatprep.subr.bf16.mxu1 %v3388_v41 }
 0x4bd   :  { %v1221_v30 = vrot.slane %v1220_v24, 2  ;;  %v1233_v37 = vmax.f32 %v1231_v19, %v1232_v54  ;;  %v1258_v32 = vrot.slane %v1257_v23, 4  ;;  %v1246_v42 = vmax.f32 %v1244_v21, %v1245_v1  ;;  %v4627_v19 = vld [vmem:[#allocation39_spill] sm:$0xff] }
 0x4bf   :  { %3247 = vmatpush3.bf16.msra.mxu1 %v3388_v41  ;;  %v1222_v63 = vmax.f32 %v1220_v24, %v1221_v30  ;;  %v1234_v59 = vrot.slane %v1233_v37, 2  ;;  %v1259_v4 = vmax.f32 %v1257_v23, %v1258_v32  ;;  %v1247_v34 = vrot.slane %v1246_v42, 2 }
 0x4c1   :  { %v1235_v38 = vmax.f32 %v1233_v37, %v1234_v59  ;;  %v1260_v12 = vrot.slane %v1259_v4, 2  ;;  %v1248_v18 = vmax.f32 %v1246_v42, %v1247_v34  ;;  %v1223_v61 = vrot.slane %v1222_v63, 1 }
 0x4c2   :  { %3249 = vmatmul.mubr.msk.bf16.vlgmr.msra.gmra.mrb[20].mxu1 %vm149_vm0, %v4076_v33 }
 0x4c3   :  { %v1236_v47 = vrot.slane %v1235_v38, 1  ;;  %v1261_v51 = vmax.f32 %v1259_v4, %v1260_v12  ;;  %v1249_v43 = vrot.slane %v1248_v18, 1  ;;  %v1300_v5 = vpop.f32.mrb[20].mxu0  ;;  %v1224_v21 = vmax.f32 %v1222_v63, %v1223_v61 }
 0x4c4   :  { %v1306_v11 = vmul.f32 %v1300_v5, %v4627_v19  ;;  %2277 = vst.msk [vmem:[#allocation2 + $0x8] sm:$0xf] %vm179_vm14, %v1300_v5  ;;  %v3226_v26 = vpop.f32.mrb[21].mxu0 }
 0x4c5   :  { %v1237_v31 = vmax.f32 %v1235_v38, %v1236_v47  ;;  %v1262_v7 = vrot.slane %v1261_v51, 1  ;;  %v1250_v41 = vmax.f32 %v1248_v18, %v1249_v43  ;;  %v1303_v54 = vpop.f32.mrb[22].mxu0  ;;  %v1535_v38 = vld [vmem:[%s4628_s13] sm:$0xf] }
 0x4c6   :  { %2268 = vrot.lane.b32.xlu0 %v1306_v11, %s3501_s0  ;;  %v3227_v33 = vpop.f32.mrb[23].mxu0  ;;  %3335 = vmatprep.subr.msk.bf16.mxu1 %vm373_vm1, %v1535_v38  ;;  %v1616_v12 = vsel %vm373_vm1, %v1535_v38, 0  ;;  %vm4637_vm1 = vcmask 781824   ;;  %v4640_v38 = vld [vmem:[#allocation23_spill] sm:$0xff] }
 0x4c7   :  { %v1263_v20 = vmax.f32 %v1261_v51, %v1262_v7  ;;  %v2233_v24 = vrot.slane %v1237_v31, 7  ;;  %v2236_v1 = vrot.slane %v1250_v41, 6  ;;  %3253 = vmatpush3.bf16.msra.mxu1 %v1616_v12  ;;  %v4629_v31 = vld [vmem:[#allocation35_spill] sm:$0xff]  ;;  %v4630_v41 = vld [vmem:[#allocation36_spill] sm:$0xff]  ;;  %v4633_v33 = vld [vmem:[#allocation38_spill] sm:$0xff] }
 0x4c8   :  { %3282 = vmatprep.subr.bf16.mxu1 %v4608_v6 }
 0x4c9   :  { %v2234_v23 = vsel %vm2201_vm8, %v2233_v24, %v1224_v21  ;;  %v2239_v32 = vrot.slane %v1263_v20, 5  ;;  %v4632_v20 = vld [vmem:[#allocation37_spill] sm:$0xff] }
 0x4ca   :  { %v2235_v30 = vsel %vm2203_vm9, %v2233_v24, %v2234_v23 }
 0x4cb   :  { %v2237_v37 = vsel %vm2206_vm10, %v2236_v1, %v2235_v30 }
 0x4cc   :  { %v2238_v42 = vsel %vm2208_vm11, %v2236_v1, %v2237_v37 }
 0x4cd   :  { %v2240_v59 = vsel %vm2211_vm12, %v2239_v32, %v2238_v42 }
 0x4ce   :  { %v2241_v63 = vsel %vm2213_vm13, %v2239_v32, %v2240_v59 }
 0x4cf   :  { %2242 = vrot.lane.b32.xlu0 %v2241_v63, %s3503_s29  ;;  %v3393_v63 = vld [vmem:[%s4635_s14 + $0x40] sm:$0xff]  }
 0x538   :  { %v2269_v4 = vpop.permute.xlu0 %2268 }
 0x541   :  { %v2243_v34 = vpop.permute.xlu0 %2242 }
 0x542   :  { %2246 = vst.msk [vmem:[#allocation2] sm:$0xf] %vm2245_vm2, %v2243_v34 }
 0x585   :  { %v1173_v18 = vpop.f32.mrb[12].mxu1 }
 0x586   :  { %v3218_v61 = vpop.f32.mrb[13].mxu1  ;;  %2273 = vrot.lane.b32.xlu0 %v1173_v18, %s3503_s29  ;;  %v1179_v51 = vmul.f32 %v1173_v18, %v4627_v19  ;;  %v4202_v18 = vld [vmem:[%s4636_s30 + $0x1] ss:$2 sm:$0xf] }
 0x587   :  { %v1176_v47 = vpop.f32.mrb[14].mxu1  ;;  %4641 = vst [vmem:[#allocation33_spill] sm:$0xff] %v4202_v18 }
 0x588   :  { %v3219_v43 = vpop.f32.mrb[15].mxu1 }
 0x58a   :  { %2263 = vrot.lane.b32.xlu0 %v1179_v51, %s3502_s5  ;;  %v2364_v51 = vrot.slane %v4202_v18, %v4640_v38 }
 0x58d   :  { %v3234_v5 = vpop.f32.mrb[16].mxu1 }
 0x58e   :  { %v1456_v7 = vmul.f32 %v3234_v5, %v4629_v31  ;;  %v1439_v11 = vpop.f32.mrb[17].mxu1 }
 0x58f   :  { %v1454_v26 = vmul.f32 %v1439_v11, %v4630_v41  ;;  %v3235_v21 = vpop.f32.mrb[18].mxu1 }
 0x590   :  { %v1457_v24 = vmul.f32 %v3235_v21, %v4632_v20  ;;  %v1442_v54 = vpop.f32.mrb[19].mxu1  ;;  %v1460_v1 = vsub.f32 %v1456_v7, %v4067_v0  ;;  %v3389_v0 = vld [vmem:[%s4631_s3] sm:$0xff]  }
 0x591   :  { %v1455_v23 = vmul.f32 %v1442_v54, %v4633_v33  ;;  %v1458_v37 = vsub.f32 %v1454_v26, %v4065_v53  ;;  %v3390_v53 = vld [vmem:[%s4631_s3 + $0x8] sm:$0xff]  }
 0x592   :  { %v1461_v30 = vsub.f32 %v1457_v24, %v4069_v62  ;;  %v3391_v62 = vld [vmem:[%s4634_s8] sm:$0xff]  }
 0x593   :  { %v1459_v32 = vsub.f32 %v1455_v23, %v4072_v22  ;;  %v3392_v22 = vld [vmem:[%s4634_s8 + $0x8] sm:$0xff]  }
 0x594   :  { %v1467_v42 = vpack.c.bf16 %v1461_v30, %v1460_v1 }
 0x595   :  { %v1466_v59 = vpack.c.bf16 %v1459_v32, %v1458_v37  ;;  %v3394_v32 = vld [vmem:[%s4635_s14] sm:$0xff]  }
 0x597   :  { %3240 = vmatprep.mubr.msk.bf16.mxu0 %vm149_vm0, %v1466_v59 }
 0x598   :  { %3241 = vmatmul.mubr.msk.bf16.vlgmr.msra.gmra.mrb[24].mxu0 %vm149_vm0, %v1467_v42  ;;  %v3395_v42 = vld [vmem:[%s4635_s14 + $0x48] sm:$0xff]  }
 0x599   :  { %3259 = vmatpush3.bf16.msra.mxu0 %v4021_v14  ;;  %3262 = vmatprep.mubr.msk.bf16.mxu0 %vm149_vm0, %v4624_v44 }
 0x59a   :  { %3260 = vmatprep.subr.bf16.mxu0 %v4012_v39 }
 0x59d   :  { %3261 = vmatpush3.bf16.msra.mxu0 %v4012_v39 }
 0x59e   :  { %3266 = vmatprep.subr.bf16.mxu0 %v3389_v0 }
 0x5a0   :  { %3263 = vmatmul.mubr.msk.bf16.vlgmr.msra.gmra.mrb[28].mxu0 %vm149_vm0, %v4626_v15 }
 0x5a1   :  { %3267 = vmatpush3.bf16.msra.mxu0 %v3389_v0  ;;  %3270 = vmatprep.mubr.msk.bf16.mxu0 %vm149_vm0, %v4021_v14  ;;  %v4195_v14 = vld [vmem:[%s4636_s30] ss:$2 sm:$0xf]  ;;  %v3396_v0 = vld [vmem:[%s4635_s14 + $0x8] sm:$0xff]  }
 0x5a2   :  { %3268 = vmatprep.subr.bf16.mxu0 %v3390_v53  ;;  %4638 = vst [vmem:[#allocation21_spill] sm:$0xff] %v4195_v14  ;;  %v2339_v12 = vrot.slane %v4195_v14, %v4640_v38  ;;  %v3405_v38 = vld [vmem:[%s4635_s14 + $0x70] sm:$0xff]  }
 0x5a5   :  { %3269 = vmatpush3.bf16.msra.mxu0 %v3390_v53  ;;  %v3397_v53 = vld [vmem:[%s4635_s14 + $0x50] sm:$0xff]  }
 0x5a6   :  { %3274 = vmatprep.subr.bf16.mxu0 %v3391_v62 }
 0x5a8   :  { %3271 = vmatmul.mubr.msk.bf16.vlgmr.msra.gmra.mrb[32].mxu0 %vm149_vm0, %v4012_v39  ;;  %v4639_v39 = vld [vmem:[#allocation24_spill] sm:$0xff] }
 0x5a9   :  { %3275 = vmatpush3.bf16.msra.mxu0 %v3391_v62  ;;  %v2335_v34 = vrot.slane %v4195_v14, %v4639_v39  ;;  %v2360_v47 = vrot.slane %v4202_v18, %v4639_v39  ;;  %v3398_v62 = vld [vmem:[%s4635_s14 + $0x10] sm:$0xff]   ;;  %v3403_v39 = vld [vmem:[%s4635_s14 + $0x68] sm:$0xff]   ;;  %v2993_v18 = vld [vmem:[%s4648_s28 + $0x1] ss:$0 sm:$0xff] }
 0x5aa   :  { %3276 = vmatprep.subr.bf16.mxu0 %v3392_v22 }
 0x5ab   :  { %v2348_v61 = vcombine.low %v2335_v34, %v2339_v12  ;;  %v2373_v11 = vcombine.low %v2360_v47, %v2364_v51  ;;  %v3404_v34 = vld [vmem:[%s4635_s14 + $0x28] sm:$0xff]   ;;  %v3406_v12 = vld [vmem:[%s4635_s14 + $0x30] sm:$0xff]   ;;  %v3408_v47 = vld [vmem:[%s4635_s14 + $0x38] sm:$0xff]  }
 0x5ad   :  { %3277 = vmatpush3.bf16.msra.mxu0 %v3392_v22  ;;  %v3399_v22 = vld [vmem:[%s4635_s14 + $0x58] sm:$0xff]  }
 0x5ae   :  { %3111 = vmatprep.subr.bf16.mxu0 %v3393_v63  ;;  %v3401_v63 = vld [vmem:[%s4635_s14 + $0x60] sm:$0xff]  }
 0x5f8   :  { %v2274_v44 = vpop.permute.xlu0 %2273 }
 0x5fc   :  { %v2264_v15 = vpop.permute.xlu0 %2263 }
 0x5fd   :  { %2266 = vst.msk [vmem:[#allocation2 + $0x4] sm:$0xf] %vm2221_vm15, %v2264_v15  ;;  %v3402_v15 = vld [vmem:[%s4635_s14 + $0x20] sm:$0xff]  }
 0x5fe   :  { %2271 = vst.msk [vmem:[#allocation2 + $0x4] sm:$0xf] %vm4637_vm1, %v2269_v4 }
 0x5ff   :  { %2276 = vst.msk [vmem:[#allocation2 + $0x4] sm:$0xf] %vm2245_vm2, %v2274_v44  ;;  %v3400_v44 = vld [vmem:[%s4635_s14 + $0x18] sm:$0xff]  }
 0x606   :  { %v2328_v4 = vld [vmem:[#allocation2] sm:$0xff] }
 0x607   :  { %v2352_v7 = vmul.f32 %v2348_v61, %v2328_v4  ;;  %v3407_v61 = vld [vmem:[%s4635_s14 + $0x78] sm:$0xff]   ;;  %v2978_v4 = vld [vmem:[%s4645_s6] ss:$0 sm:$0xff] }
 0x609   :  { %v2377_v20 = vadd.f32 %v2373_v11, %v2352_v7 }
 0x60b   :  { %v2441_v23 = vcombine.high %v2377_v20, %v2377_v20  ;;  %v2445_v51 = vpack.c.bf16 %v2377_v20, %v2377_v20 }
 0x60d   :  { %v2446_v59 = vpack.c.bf16 %v2441_v23, %v2441_v23  ;;  %v2980_v23 = vld [vmem:[%s4646_s12 + $0x1] ss:$0 sm:$0xff] }
 0x66b   :  { %v3242_v43 = vpop.f32.mrb[24].mxu0 }
 0x66c   :  { %v1520_v5 = vpop.f32.mrb[25].mxu0 }
 0x66d   :  { %v3243_v31 = vpop.f32.mrb[26].mxu0 }
 0x66e   :  { %v1537_v41 = vpack.c.bf16 %v3243_v31, %v3242_v43  ;;  %v1523_v26 = vpop.f32.mrb[27].mxu0 }
 0x66f   :  { %v1536_v21 = vpack.c.bf16 %v1523_v26, %v1520_v5  ;;  %v2979_v26 = vld [vmem:[%s4646_s12] ss:$0 sm:$0xff] }
 0x671   :  { %3254 = vmatprep.mubr.msk.bf16.mxu1 %vm4642_vm4, %v1536_v21 }
 0x672   :  { %3255 = vmatmul.mubr.msk.bf16.vlgmr.msra.gmra.mrb[20].mxu1 %vm4643_vm6, %v1537_v41 }
 0x673   :  { %v3264_v24 = vpop.f32.mrb[28].mxu0  ;;  %3286 = vmatprep.mubr.msk.bf16.mxu1 %vm4644_vm7, %v4608_v6 }
 0x674   :  { %v1742_v54 = vpop.f32.mrb[29].mxu0 }
 0x675   :  { %v3265_v33 = vpop.f32.mrb[30].mxu0 }
 0x676   :  { %v1762_v1 = vpack.c.bf16 %v3265_v33, %v3264_v24  ;;  %v1745_v30 = vpop.f32.mrb[31].mxu0 }
 0x677   :  { %v1761_v37 = vpack.c.bf16 %v1745_v30, %v1742_v54 }
 0x679   :  { %3278 = vmatprep.mubr.msk.bf16.mxu0 %vm149_vm0, %v1761_v37 }
 0x67a   :  { %3279 = vmatmul.mubr.msk.bf16.vlgmr.msra.gmra.mrb[32].mxu0 %vm149_vm0, %v1762_v1 }
 0x67b   :  { %3112 = vmatpush3.bf16.msra.mxu0 %v3394_v32  ;;  %2672 = vmatprep.mubr.bf16.mxu0 %v2446_v59 }
 0x67c   :  { %3113 = vmatprep.subr.bf16.mxu0 %v3395_v42  ;;  %v2991_v42 = vld [vmem:[%s4647_s20] ss:$0 sm:$0xff] }
 0x67f   :  { %3114 = vmatpush3.bf16.msra.mxu0 %v3396_v0 }
 0x680   :  { %3115 = vmatprep.subr.bf16.mxu0 %v3397_v53 }
 0x683   :  { %3116 = vmatpush3.bf16.msra.mxu0 %v3398_v62 }
 0x684   :  { %3117 = vmatprep.subr.bf16.mxu0 %v3399_v22 }
 0x687   :  { %3118 = vmatpush3.bf16.msra.mxu0 %v3400_v44 }
 0x688   :  { %3119 = vmatprep.subr.bf16.mxu0 %v3401_v63 }
 0x68b   :  { %3120 = vmatpush3.bf16.msra.mxu0 %v3402_v15 }
 0x68c   :  { %3121 = vmatprep.subr.bf16.mxu0 %v3403_v39 }
 0x68f   :  { %3122 = vmatpush3.bf16.msra.mxu0 %v3404_v34 }
 0x690   :  { %3123 = vmatprep.subr.bf16.mxu0 %v3405_v38 }
 0x693   :  { %3124 = vmatpush3.bf16.msra.mxu0 %v3406_v12 }
 0x694   :  { %3125 = vmatprep.subr.bf16.mxu0 %v3407_v61 }
 0x697   :  { %3126 = vmatpush3.bf16.msra.mxu0 %v3408_v47 }
 0x698   :  { %3298 = vmatprep.subr.bf16.mxu0 %v4608_v6 }
 0x69a   :  { %2673 = vmatmul.mubr.bf16.vlgmr.msra.gmra.mrb[36].mxu0 %v2445_v51 }
 0x69b   :  { %3302 = vmatprep.mubr.msk.bf16.mxu0 %vm4644_vm7, %v4608_v6 }
 0x745   :  { %v3256_v43 = vpop.f32.mrb[20].mxu1 }
 0x746   :  { %v1676_v5 = vadd.f32 %v3256_v43, %v2978_v4  ;;  %v1652_v31 = vpop.f32.mrb[21].mxu1 }
 0x747   :  { %v1674_v7 = vadd.f32 %v2978_v4, %v1652_v31  ;;  %v3257_v11 = vpop.f32.mrb[22].mxu1 }
 0x748   :  { %vm1680_vm3 = vcmp.gt.f32.partialorder %v1676_v5, 0.0  ;;  %v1684_v41 = vmul.f32 0.01, %v1676_v5  ;;  %v1677_v21 = vadd.f32 %v3257_v11, %v2978_v4  ;;  %v1655_v24 = vpop.f32.mrb[23].mxu1 }
 0x749   :  { %vm1678_vm5 = vcmp.gt.f32.partialorder %v1674_v7, 0.0  ;;  %v1682_v20 = vmul.f32 0.01, %v1674_v7  ;;  %v1675_v54 = vadd.f32 %v2978_v4, %v1655_v24 }
 0x74a   :  { %v1688_v33 = vsel %vm1680_vm3, %v1676_v5, %v1684_v41  ;;  %vm1681_vm1 = vcmp.gt.f32.partialorder %v1677_v21, 0.0  ;;  %v1685_v1 = vmul.f32 0.01, %v1677_v21 }
 0x74b   :  { %v1697_v30 = vmul.f32 %v2979_v26, %v1688_v33  ;;  %v1686_v37 = vsel %vm1678_vm5, %v1674_v7, %v1682_v20  ;;  %vm1679_vm4 = vcmp.gt.f32.partialorder %v1675_v54, 0.0  ;;  %v1683_v32 = vmul.f32 0.01, %v1675_v54 }
 0x74c   :  { %v1695_v59 = vmul.f32 %v2979_v26, %v1686_v37  ;;  %v1689_v0 = vsel %vm1681_vm1, %v1677_v21, %v1685_v1 }
 0x74d   :  { %v4236_v53 = vadd.f32 %v2980_v23, %v1697_v30  ;;  %v1698_v62 = vmul.f32 %v2979_v26, %v1689_v0  ;;  %v1687_v22 = vsel %vm1679_vm4, %v1675_v54, %v1683_v32  ;;  %v3280_v44 = vpop.f32.mrb[32].mxu0 }
 0x74e   :  { %v4238_v63 = vadd.f32 %v2980_v23, %v1695_v59  ;;  %v1696_v15 = vmul.f32 %v2979_v26, %v1687_v22  ;;  %v1910_v39 = vadd.f32 %v3280_v44, %v2991_v42  ;;  %v1886_v34 = vpop.f32.mrb[33].mxu0  ;;  %v2992_v44 = vld [vmem:[%s4648_s28] ss:$0 sm:$0xff] }
 0x74f   :  { %v1987_v38 = vmul.f32 %v4236_v53, %v3745_v48  ;;  %v1991_v12 = vmul.f32 %v4236_v53, %v3741_v46  ;;  %v4246_v61 = vmul.f32 %v4236_v53, %v3749_v50  ;;  %v4248_v47 = vadd.f32 %v2980_v23, %v1698_v62  ;;  %v3281_v51 = vpop.f32.mrb[34].mxu0 }
 0x750   :  { %v1985_v4 = vmul.f32 %v4238_v63, %v3763_v57  ;;  %v1989_v43 = vmul.f32 %v4238_v63, %v3739_v45  ;;  %v1993_v5 = vmul.f32 %v4238_v63, %v3803_v35  ;;  %v4258_v31 = vmul.f32 %v4238_v63, %v3753_v52  ;;  %v1889_v7 = vpop.f32.mrb[35].mxu0 }
 0x751   :  { %v2003_v11 = vadd.f32 %v1987_v38, %v3789_v13  ;;  %v2007_v41 = vadd.f32 %v1991_v12, %v3784_v10  ;;  %v1988_v26 = vmul.f32 %v4248_v47, %v3761_v56  ;;  %v1992_v21 = vmul.f32 %v4248_v47, %v3747_v49 }
 0x752   :  { %v2001_v24 = vadd.f32 %v1985_v4, %v3814_v27  ;;  %v2005_v20 = vadd.f32 %v1989_v43, %v3776_v3  ;;  %v4269_v54 = vadd.f32 %v1993_v5, %v3826_v36  ;;  %v4273_v33 = vmul.f32 %v4248_v47, %v3765_v58 }
 0x753   :  { %v4276_v1 = vsel %vm149_vm0, %v2003_v11, -inf  ;;  %v4279_v30 = vsel %vm149_vm0, %v2007_v41, -inf  ;;  %v4282_v37 = vadd.f32 %v1988_v26, %v3800_v29  ;;  %v4285_v32 = vadd.f32 %v1992_v21, %v3792_v16  ;;  %v4650_v11 = vld [vmem:[#allocation27_spill] sm:$0xff]  ;;  %v4651_v26 = vld [vmem:[#allocation28_spill] sm:$0xff] }
 0x754   :  { %4649 = vst [vmem:[#allocation22_spill] sm:$0xff] %v4269_v54  ;;  %v4288_v59 = vsel %vm149_vm0, %v2001_v24, -inf  ;;  %v4291_v0 = vsel %vm149_vm0, %v2005_v20, -inf  ;;  %v1705_v62 = vadd.f32 %v2980_v23, %v1696_v15  ;;  %vm1914_vm6 = vcmp.gt.f32.partialorder %v1910_v39, 0.0 }
 0x755   :  { %v1918_v22 = vmul.f32 0.01, %v1910_v39  ;;  %v1908_v38 = vadd.f32 %v2991_v42, %v1886_v34  ;;  %v1911_v12 = vadd.f32 %v3281_v51, %v2991_v42  ;;  %v1909_v4 = vadd.f32 %v2991_v42, %v1889_v7 }
 0x756   :  { %v1986_v43 = vmul.f32 %v1705_v62, %v3774_v2  ;;  %v1990_v5 = vmul.f32 %v1705_v62, %v3759_v55  ;;  %v1994_v41 = vmul.f32 %v1705_v62, %v4650_v11  ;;  %v4298_v21 = vmul.f32 %v1705_v62, %v4651_v26 }
 0x757   :  { %v1922_v24 = vsel %vm1914_vm6, %v1910_v39, %v1918_v22  ;;  %vm1912_vm3 = vcmp.gt.f32.partialorder %v1908_v38, 0.0  ;;  %v1916_v20 = vmul.f32 0.01, %v1908_v38  ;;  %vm1915_vm5 = vcmp.gt.f32.partialorder %v1911_v12, 0.0 }
 0x758   :  { %v2002_v23 = vadd.f32 %v1986_v43, %v3824_v28  ;;  %v2006_v15 = vadd.f32 %v1990_v5, %v3780_v8  ;;  %v4304_v42 = vadd.f32 %v1994_v41, %v4616_v25  ;;  %v1931_v34 = vmul.f32 %v2992_v44, %v1922_v24 }
 0x759   :  { %v1920_v51 = vsel %vm1912_vm3, %v1908_v38, %v1916_v20  ;;  %v1919_v7 = vmul.f32 0.01, %v1911_v12  ;;  %vm1913_vm1 = vcmp.gt.f32.partialorder %v1909_v4, 0.0  ;;  %v1917_v14 = vmul.f32 0.01, %v1909_v4 }
 0x75a   :  { %v4307_v19 = vsel %vm149_vm0, %v2002_v23, -inf  ;;  %v4310_v39 = vsel %vm149_vm0, %v2006_v15, -inf  ;;  %v4312_v22 = vadd.f32 %v2993_v18, %v1931_v34  ;;  %v1929_v54 = vmul.f32 %v2992_v44, %v1920_v51 }
 0x75b   :  { %v2019_v43 = vmax.f32 %v4288_v59, %v4307_v19  ;;  %v2032_v5 = vmax.f32 %v4291_v0, %v4310_v39  ;;  %v1923_v41 = vsel %vm1915_vm5, %v1911_v12, %v1919_v7  ;;  %v1921_v38 = vsel %vm1913_vm1, %v1909_v4, %v1917_v14 }
 0x75c   :  { %v2114_v24 = vmul.f32 %v4312_v22, %v3745_v48  ;;  %v2118_v20 = vmul.f32 %v4312_v22, %v3741_v46  ;;  %v4324_v23 = vmul.f32 %v4312_v22, %v3749_v50  ;;  %v1938_v15 = vadd.f32 %v2993_v18, %v1929_v54 }
 0x75d   :  { %v1932_v34 = vmul.f32 %v2992_v44, %v1923_v41  ;;  %v1930_v51 = vmul.f32 %v2992_v44, %v1921_v38  ;;  %v1942_v19 = vpack.c.bf16 %v1705_v62, %v4238_v63  ;;  %v1943_v59 = vpack.c.bf16 %v4248_v47, %v4236_v53  ;;  %v4652_v41 = vld [vmem:[#allocation29_spill] sm:$0xff]  ;;  %v4653_v38 = vld [vmem:[#allocation32_spill] sm:$0xff] }
 0x75e   :  { %v2130_v14 = vadd.f32 %v2114_v24, %v3789_v13  ;;  %v2134_v0 = vadd.f32 %v2118_v20, %v3784_v10  ;;  %v2112_v48 = vmul.f32 %v1938_v15, %v3763_v57  ;;  %v2116_v46 = vmul.f32 %v1938_v15, %v3739_v45  ;;  %v4654_v24 = vld [vmem:[#allocation30_spill] sm:$0xff] }
 0x75f   :  { %v2120_v12 = vmul.f32 %v1938_v15, %v3803_v35  ;;  %v4335_v50 = vmul.f32 %v1938_v15, %v3753_v52  ;;  %v4337_v54 = vadd.f32 %v2993_v18, %v1932_v34  ;;  %v1939_v44 = vadd.f32 %v2993_v18, %v1930_v51  ;;  %3283 = vmatpush3.bf16.msra.mxu1 %v1942_v19  ;;  %v4656_v51 = vld [vmem:[#allocation34_spill] sm:$0xff] }
 0x760   :  { %v4340_v63 = vsel %vm149_vm0, %v2130_v14, -inf  ;;  %v4343_v13 = vsel %vm149_vm0, %v2134_v0, -inf  ;;  %v2128_v10 = vadd.f32 %v2112_v48, %v3814_v27  ;;  %v2132_v57 = vadd.f32 %v2116_v46, %v3776_v3  ;;  %3284 = vmatprep.subr.bf16.mxu1 %v4608_v6  ;;  %v4657_v0 = vld [vmem:[#allocation22_spill] sm:$0xff] }
 0x761   :  { %v4349_v45 = vadd.f32 %v2120_v12, %v3826_v36  ;;  %v2115_v52 = vmul.f32 %v4337_v54, %v3761_v56  ;;  %v2119_v35 = vmul.f32 %v4337_v54, %v3747_v49  ;;  %v2123_v18 = vmul.f32 %v4337_v54, %v3765_v58 }
 0x762   :  { %v4358_v62 = vsel %vm149_vm0, %v2128_v10, -inf  ;;  %v4361_v27 = vsel %vm149_vm0, %v2132_v57, -inf  ;;  %v2113_v3 = vmul.f32 %v1939_v44, %v3774_v2  ;;  %v2117_v36 = vmul.f32 %v1939_v44, %v3759_v55 }
 0x763   :  { %v4366_v4 = vadd.f32 %v2115_v52, %v3800_v29  ;;  %v4369_v56 = vadd.f32 %v2119_v35, %v3792_v16  ;;  %v2121_v49 = vmul.f32 %v1939_v44, %v4650_v11  ;;  %v2125_v58 = vmul.f32 %v1939_v44, %v4651_v26  ;;  %3285 = vmatpush3.bf16.msra.mxu1 %v1943_v59 }
 0x764   :  { %v2129_v7 = vadd.f32 %v2113_v3, %v3824_v28  ;;  %v2133_v39 = vadd.f32 %v2117_v36, %v3780_v8  ;;  %3290 = vmatprep.subr.bf16.mxu1 %v4608_v6  ;;  %v2069_v2 = vpack.c.bf16 %v1939_v44, %v1938_v15  ;;  %v2070_v55 = vpack.c.bf16 %v4337_v54, %v4312_v22 }
 0x765   :  { %v4379_v29 = vadd.f32 %v2121_v49, %v4616_v25  ;;  %v1999_v16 = vmul.f32 %v4236_v53, %v3782_v9  ;;  %v2000_v11 = vmul.f32 %v4248_v47, %v3807_v60  ;;  %v2011_v28 = vadd.f32 %v4246_v61, %v3794_v17  ;;  %v4655_v61 = vld [vmem:[#allocation31_spill] sm:$0xff] }
 0x766   :  { %v2145_v8 = vsel %vm149_vm0, %v2129_v7, -inf  ;;  %v2158_v26 = vsel %vm149_vm0, %v2133_v39, -inf  ;;  %3287 = vmatmul.mubr.msk.bf16.vlgmr.msra.gmra.mrb[24].mxu1 %vm149_vm0, %v4652_v41  ;;  %v2012_v25 = vadd.f32 %v4273_v33, %v4653_v38  ;;  %v2013_v20 = vadd.f32 %v4258_v31, %v4654_v24 }
 0x767   :  { %v2146_v53 = vmax.f32 %v4358_v62, %v2145_v8  ;;  %v2159_v47 = vmax.f32 %v4361_v27, %v2158_v26  ;;  %3291 = vmatpush3.bf16.msra.mxu1 %v2069_v2  ;;  %3294 = vmatprep.mubr.msk.bf16.mxu1 %vm4644_vm7, %v4608_v6  ;;  %v2014_v15 = vadd.f32 %v4298_v21, %v4655_v61  ;;  %v2022_v34 = vsel %vm149_vm0, %v4282_v37, -inf }
 0x768   :  { %3292 = vmatprep.subr.bf16.mxu1 %v4608_v6  ;;  %v2015_v33 = vadd.f32 %v1999_v16, %v4625_v40  ;;  %v2016_v31 = vadd.f32 %v2000_v11, %v4656_v51  ;;  %v2021_v19 = vmax.f32 %v2019_v43, %v4276_v1  ;;  %v2034_v59 = vmax.f32 %v2032_v5, %v4279_v30 }
 0x769   :  { %v2035_v14 = vsel %vm149_vm0, %v4285_v32, -inf  ;;  %v2043_v48 = vsel %vm149_vm0, %v4657_v0, -inf  ;;  %v2044_v21 = vsel %vm149_vm0, %v4304_v42, -inf  ;;  %v2046_v37 = vsel %vm149_vm0, %v2011_v28, -inf }
 0x76a   :  { %v2023_v46 = vmax.f32 %v2021_v19, %v2022_v34  ;;  %v2036_v12 = vmax.f32 %v2034_v59, %v2035_v14  ;;  %v2045_v44 = vmax.f32 %v2043_v48, %v2044_v21  ;;  %v2048_v10 = vsel %vm149_vm0, %v2012_v25, -inf }
 0x76b   :  { %3293 = vmatpush3.bf16.msra.mxu1 %v2070_v55  ;;  %v2056_v1 = vsel %vm149_vm0, %v2013_v20, -inf  ;;  %v2057_v30 = vsel %vm149_vm0, %v2014_v15, -inf  ;;  %v2059_v32 = vsel %vm149_vm0, %v2015_v33, -inf  ;;  %v2061_v43 = vsel %vm149_vm0, %v2016_v31, -inf }
 0x76c   :  { %v2024_v5 = vrot.slane %v2023_v46, 4  ;;  %v2037_v57 = vrot.slane %v2036_v12, 4  ;;  %v2047_v52 = vmax.f32 %v2045_v44, %v2046_v37  ;;  %v2058_v42 = vmax.f32 %v2056_v1, %v2057_v30 }
 0x76d   :  { %v3127_v35 = vpop.f32.mrb[36].mxu0  ;;  %v2126_v62 = vmul.f32 %v4312_v22, %v3782_v9  ;;  %v2127_v27 = vmul.f32 %v4337_v54, %v3807_v60  ;;  %v2138_v3 = vadd.f32 %v4324_v23, %v3794_v17  ;;  %v2139_v36 = vadd.f32 %v2123_v18, %v4653_v38 }
 0x76e   :  { %3295 = vmatmul.mubr.msk.bf16.vlgmr.msra.gmra.mrb[28].mxu1 %vm149_vm0, %v4652_v41  ;;  %v3128_v49 = vpop.f32.mrb[37].mxu0  ;;  %v2025_v7 = vmax.f32 %v2023_v46, %v2024_v5  ;;  %v2038_v39 = vmax.f32 %v2036_v12, %v2037_v57  ;;  %v2049_v2 = vmax.f32 %v2047_v52, %v2048_v10  ;;  %v2060_v55 = vmax.f32 %v2058_v42, %v2059_v32 }
 0x76f   :  { %v4429_v16 = vadd.f32 %v3128_v49, %v3127_v35  ;;  %v3130_v11 = vpop.f32.mrb[38].mxu0  ;;  %v2140_v9 = vadd.f32 %v4335_v50, %v4654_v24  ;;  %v2141_v60 = vadd.f32 %v2125_v58, %v4655_v61  ;;  %v2142_v17 = vadd.f32 %v2126_v62, %v4625_v40 }
 0x770   :  { %v3131_v22 = vpop.f32.mrb[39].mxu0  ;;  %v2026_v23 = vrot.slane %v2025_v7, 2  ;;  %v2039_v54 = vrot.slane %v2038_v39, 2  ;;  %v2050_v18 = vrot.slane %v2049_v2, 4  ;;  %v2062_v28 = vmax.f32 %v2060_v55, %v2061_v43 }
 0x771   :  { %v2143_v8 = vadd.f32 %v2127_v27, %v4656_v51  ;;  %v2148_v26 = vmax.f32 %v2146_v53, %v4340_v63  ;;  %v2149_v41 = vsel %vm149_vm0, %v4366_v4, -inf  ;;  %v2161_v38 = vmax.f32 %v2159_v47, %v4343_v13 }
 0x772   :  { %v2027_v25 = vmax.f32 %v2025_v7, %v2026_v23  ;;  %v2040_v50 = vmax.f32 %v2038_v39, %v2039_v54  ;;  %v2051_v24 = vmax.f32 %v2049_v2, %v2050_v18  ;;  %v2063_v58 = vrot.slane %v2062_v28, 4 }
 0x773   :  { %v2150_v20 = vmax.f32 %v2148_v26, %v2149_v41  ;;  %v2162_v40 = vsel %vm149_vm0, %v4369_v56, -inf  ;;  %v2170_v61 = vsel %vm149_vm0, %v4349_v45, -inf  ;;  %v2171_v15 = vsel %vm149_vm0, %v4379_v29, -inf }
 0x774   :  { %v2028_v63 = vrot.slane %v2027_v25, 1  ;;  %v2041_v53 = vrot.slane %v2040_v50, 1  ;;  %v2052_v34 = vrot.slane %v2051_v24, 2  ;;  %v2064_v4 = vmax.f32 %v2062_v28, %v2063_v58 }
 0x775   :  { %v2151_v33 = vrot.slane %v2150_v20, 4  ;;  %v2163_v13 = vmax.f32 %v2161_v38, %v2162_v40  ;;  %v2172_v47 = vmax.f32 %v2170_v61, %v2171_v15  ;;  %v2173_v51 = vsel %vm149_vm0, %v2138_v3, -inf }
 0x776   :  { %v2029_v31 = vmax.f32 %v2027_v25, %v2028_v63  ;;  %v2042_v19 = vmax.f32 %v2040_v50, %v2041_v53  ;;  %v2053_v59 = vmax.f32 %v2051_v24, %v2052_v34  ;;  %v2065_v14 = vrot.slane %v2064_v4, 2 }
 0x777   :  { %v2152_v56 = vmax.f32 %v2150_v20, %v2151_v33  ;;  %v2164_v0 = vrot.slane %v2163_v13, 4  ;;  %v2174_v48 = vmax.f32 %v2172_v47, %v2173_v51  ;;  %v2175_v45 = vsel %vm149_vm0, %v2139_v36, -inf  ;;  %v3409_v47 = vld [vmem:[%s4635_s14 + $0x80] sm:$0xff]  }
 0x778   :  { %v2054_v21 = vrot.slane %v2053_v59, 1  ;;  %v2066_v29 = vmax.f32 %v2064_v4, %v2065_v14  ;;  %v2282_v37 = vrot.slane %v2042_v19, 7  ;;  %v2183_v46 = vsel %vm149_vm0, %v2140_v9, -inf  ;;  %v3411_v19 = vld [vmem:[%s4635_s14 + $0x90] sm:$0xff]   ;;  %v3413_v14 = vld [vmem:[%s4635_s14 + $0xa0] sm:$0xff]  }
 0x779   :  { %v2153_v12 = vrot.slane %v2152_v56, 2  ;;  %v2165_v44 = vmax.f32 %v2163_v13, %v2164_v0  ;;  %v2176_v10 = vmax.f32 %v2174_v48, %v2175_v45  ;;  %v2184_v1 = vsel %vm149_vm0, %v2141_v60, -inf  ;;  %v3415_v0 = vld [vmem:[%s4635_s14 + $0xb0] sm:$0xff]   ;;  %v3416_v48 = vld [vmem:[%s4635_s14 + $0xb8] sm:$0xff]  }
 0x77a   :  { %v2055_v30 = vmax.f32 %v2053_v59, %v2054_v21  ;;  %v2067_v32 = vrot.slane %v2066_v29, 1  ;;  %v2283_v43 = vsel %vm2201_vm8, %v2282_v37, %v2029_v31  ;;  %v2185_v5 = vmax.f32 %v2183_v46, %v2184_v1  ;;  %v3410_v31 = vld [vmem:[%s4635_s14 + $0x88] sm:$0xff]   ;;  %v3412_v59 = vld [vmem:[%s4635_s14 + $0x98] sm:$0xff]   ;;  %v3419_v46 = vld [vmem:[%s4635_s14 + $0xd0] sm:$0xff]  }
 0x77b   :  { %v2284_v57 = vsel %vm2203_vm9, %v2282_v37, %v2283_v43  ;;  %v2154_v52 = vmax.f32 %v2152_v56, %v2153_v12  ;;  %v2166_v42 = vrot.slane %v2165_v44, 2  ;;  %v2177_v35 = vrot.slane %v2176_v10, 4  ;;  %v3414_v56 = vld [vmem:[%s4635_s14 + $0xa8] sm:$0xff]  }
 0x77c   :  { %v2068_v62 = vmax.f32 %v2066_v29, %v2067_v32  ;;  %v2285_v27 = vrot.slane %v2055_v30, 6  ;;  %v2186_v3 = vsel %vm149_vm0, %v2142_v17, -inf  ;;  %v2188_v55 = vsel %vm149_vm0, %v2143_v8, -inf  ;;  %v3417_v29 = vld [vmem:[%s4635_s14 + $0xc0] sm:$0xff]   ;;  %v3418_v37 = vld [vmem:[%s4635_s14 + $0xc8] sm:$0xff]  }
 0x77d   :  { %v2167_v36 = vmax.f32 %v2165_v44, %v2166_v42  ;;  %v2178_v49 = vmax.f32 %v2176_v10, %v2177_v35  ;;  %v2187_v7 = vmax.f32 %v2185_v5, %v2186_v3  ;;  %v2155_v9 = vrot.slane %v2154_v52, 1  ;;  %v3420_v44 = vld [vmem:[%s4635_s14 + $0xd8] sm:$0xff]   ;;  %v4659_v10 = vld [vmem:[#allocation39_spill] sm:$0xff] }
 0x77e   :  { %v2286_v39 = vsel %vm2206_vm10, %v2285_v27, %v2284_v57  ;;  %v2288_v2 = vrot.slane %v2068_v62, 5  ;;  %v3504_v51 = vmov 0   ;;  %v3421_v5 = vld [vmem:[%s4635_s14 + $0xe0] sm:$0xff]  }
 0x77f   :  { %v2287_v11 = vsel %vm2208_vm11, %v2285_v27, %v2286_v39  ;;  %v2168_v60 = vrot.slane %v2167_v36, 1  ;;  %v2179_v22 = vrot.slane %v2178_v49, 2  ;;  %v2189_v54 = vmax.f32 %v2187_v7, %v2188_v55  ;;  %2680 = vmatprep.subr.bf16.mxu1 %v3504_v51  ;;  %v4661_v7 = vld [vmem:[#allocation25_spill] sm:$0xff]  ;;  %v4664_v55 = vld [vmem:[#allocation26_spill] sm:$0xff] }
 0x780   :  { %v2289_v23 = vsel %vm2211_vm12, %v2288_v2, %v2287_v11  ;;  %v2156_v41 = vmax.f32 %v2154_v52, %v2155_v9  ;;  %2681 = vmatpush1.bf16.msra.mxu1 %v3409_v47  ;;  %v3422_v52 = vld [vmem:[%s4635_s14 + $0xe8] sm:$0xff]   ;;  %v4662_v39 = vld [vmem:[#allocation21_spill] sm:$0xff] }
 0x781   :  { %v2290_v18 = vsel %vm2213_vm13, %v2288_v2, %v2289_v23  ;;  %v2169_v28 = vmax.f32 %v2167_v36, %v2168_v60  ;;  %v2180_v17 = vmax.f32 %v2178_v49, %v2179_v22  ;;  %v2190_v26 = vrot.slane %v2189_v54, 4  ;;  %2682 = vmatprep.subr.bf16.mxu1 %v3504_v51  ;;  %v4665_v9 = vld [vmem:[#allocation33_spill] sm:$0xff] }
 0x782   :  { %2291 = vrot.lane.b32.xlu1 %v2290_v18, %s3502_s5  ;;  %v2343_v2 = vrot.slane %v4662_v39, %v4661_v7  ;;  %v2347_v11 = vrot.slane %v4662_v39, %v4664_v55  ;;  %v2368_v60 = vrot.slane %v4665_v9, %v4661_v7  ;;  %v2372_v22 = vrot.slane %v4665_v9, %v4664_v55 }
 0x783   :  { %v2181_v38 = vrot.slane %v2180_v17, 1  ;;  %v2299_v25 = vrot.slane %v2169_v28, 7  ;;  %v2191_v8 = vmax.f32 %v2189_v54, %v2190_v26 }
 0x784   :  { %2683 = vmatpush1.bf16.msra.mxu1 %v3410_v31  ;;  %v2349_v23 = vcombine.low %v2343_v2, %v2347_v11  ;;  %v2374_v54 = vcombine.low %v2368_v60, %v2372_v22 }
 0x785   :  { %v2182_v50 = vmax.f32 %v2180_v17, %v2181_v38  ;;  %v2300_v24 = vsel %vm2201_vm8, %v2299_v25, %v2156_v41  ;;  %v2192_v58 = vrot.slane %v2191_v8, 2  ;;  %2684 = vmatprep.subr.bf16.mxu1 %v3504_v51  ;;  %vm4658_vm8 = vcmask 781824  }
 0x786   :  { %v2301_v20 = vsel %vm2203_vm9, %v2299_v25, %v2300_v24  ;;  %vm4660_vm9 = vmmov %vm4658_vm8  ;;  %v3423_v25 = vld [vmem:[%s4663_s1] sm:$0xff]  }
 0x787   :  { %v2302_v40 = vrot.slane %v2182_v50, 6  ;;  %v2193_v61 = vmax.f32 %v2191_v8, %v2192_v58  ;;  %3299 = vmatpush3.bf16.msra.mxu0 %v3423_v25  ;;  %v3424_v8 = vld [vmem:[%s4663_s1 + $0x8] sm:$0xff]   ;;  %v2997_v50 = vld [vmem:[%s4666_s2] ss:$0 sm:$0xff] }
 0x788   :  { %2685 = vmatpush1.bf16.msra.mxu1 %v3411_v19  ;;  %3300 = vmatprep.subr.bf16.mxu0 %v4608_v6  ;;  %v2675_v24 = vadd.f32 %v4429_v16, %v2997_v50 }
 0x789   :  { %v2303_v15 = vsel %vm2206_vm10, %v2302_v40, %v2301_v20  ;;  %v2194_v63 = vrot.slane %v2193_v61, 1  ;;  %2686 = vmatprep.subr.bf16.mxu1 %v3504_v51  ;;  %vm2636_vm10 = vcmask 785408  }
 0x78a   :  { %v2304_v53 = vsel %vm2208_vm11, %v2302_v40, %v2303_v15  ;;  %vm2805_vm11 = vcmask 130048  }
 0x78b   :  { %v2195_v34 = vmax.f32 %v2193_v61, %v2194_v63  ;;  %3301 = vmatpush3.bf16.msra.mxu0 %v3424_v8 }
 0x78c   :  { %2687 = vmatpush1.bf16.msra.mxu1 %v3412_v59  ;;  %3306 = vmatprep.subr.bf16.mxu0 %v4608_v6  ;;  %v3033_v59 = vld [vmem:[%s3669_s19] ss:$0 sm:$0xff]  ;;  %s3505_s19 = smov [#allocation3]  }
 0x78d   :  { %v2305_v4 = vrot.slane %v2195_v34, 5  ;;  %2688 = vmatprep.subr.bf16.mxu1 %v3504_v51  ;;  %v3425_v34 = vld [vmem:[%s3664_s24] sm:$0xff]   ;;  %s2870_s24 = sshll.u32 %s3505_s19, 4  ;;  %s2871_s24 = int_to_ptr.vmem [resolvable:$true] %s2870_s24 }
 0x78e   :  { %p3448_p1 = scmp.lt.s32.totalorder %s2871_s24, %s2871_s24 }
 0x78f   :  { %v2306_v33 = vsel %vm2211_vm12, %v2305_v4, %v2304_v53  ;;  %vm2849_vm12 = vcmask 60416  }
 0x790   :  { %v2307_v13 = vsel %vm2213_vm13, %v2305_v4, %v2306_v33  ;;  %2689 = vmatpush1.bf16.msra.mxu1 %v3413_v14  ;;  %v3029_v4 = vld [vmem:[%s3659_s4] ss:$0 sm:$0xff]  ;;  %s3443_s4 = scalar_lea.vmem %s2871_s24, 64 }
 0x791   :  { %2308 = vrot.lane.b32.xlu0 %v2307_v13, %s3501_s0  ;;  %2690 = vmatprep.subr.bf16.mxu1 %v3504_v51  ;;  %p3444_p0 = scmp.ne.s32.totalorder %s2871_s24, %s3443_s4  ;;  %p3449_p2 = scmp.lt.s32.totalorder %s3443_s4, %s3443_s4 }
 0x793   :  { %p3450_p3 = por %p3449_p2, %p3448_p1 }
 0x794   :  { %2691 = vmatpush1.bf16.msra.mxu1 %v3414_v56 }
 0x795   :  { %2692 = vmatprep.subr.bf16.mxu1 %v3504_v51  ;;  %p3451_p4 = pnand %p3450_p3, %p3444_p0 }
 0x798   :  { %2693 = vmatpush1.bf16.msra.mxu1 %v3415_v0 }
 0x799   :  { %2694 = vmatprep.subr.bf16.mxu1 %v3504_v51 }
 0x79c   :  { %2695 = vmatpush1.bf16.msra.mxu1 %v3416_v48 }
 0x79d   :  { %2696 = vmatprep.subr.bf16.mxu1 %v3504_v51 }
 0x7a0   :  { %2697 = vmatpush1.bf16.msra.mxu1 %v3417_v29 }
 0x7a1   :  { %2698 = vmatprep.subr.bf16.mxu1 %v3504_v51 }
 0x7a4   :  { %2699 = vmatpush1.bf16.msra.mxu1 %v3418_v37 }
 0x7a5   :  { %2700 = vmatprep.subr.bf16.mxu1 %v3504_v51 }
 0x7a8   :  { %2701 = vmatpush1.bf16.msra.mxu1 %v3419_v46 }
 0x7a9   :  { %2702 = vmatprep.subr.bf16.mxu1 %v3504_v51 }
 0x7ac   :  { %2703 = vmatpush1.bf16.msra.mxu1 %v3420_v44 }
 0x7ad   :  { %2704 = vmatprep.subr.bf16.mxu1 %v3504_v51 }
 0x7b0   :  { %2705 = vmatpush1.bf16.msra.mxu1 %v3421_v5 }
 0x7b1   :  { %2706 = vmatprep.subr.bf16.mxu1 %v3504_v51 }
 0x7b4   :  { %2707 = vmatpush1.bf16.msra.mxu1 %v3422_v52 }
 0x7f4   :  { %v2292_v45 = vpop.permute.xlu1 %2291 }
 0x7f5   :  { %2294 = vst.msk [vmem:[#allocation2 + $0x8] sm:$0xf] %vm2221_vm15, %v2292_v45 }
 0x803   :  { %v2309_v21 = vpop.permute.xlu0 %2308 }
 0x804   :  { %2311 = vst.msk [vmem:[#allocation2 + $0x8] sm:$0xf] %vm4658_vm8, %v2309_v21 }
 0x839   :  { %v1978_v12 = vpop.f32.mrb[24].mxu1 }
 0x83a   :  { %v1984_v1 = vmul.f32 %v1978_v12, %v4659_v10  ;;  %v3288_v30 = vpop.f32.mrb[25].mxu1  ;;  %2319 = vrot.lane.b32.xlu1 %v1978_v12, %s3502_s5 }
 0x83b   :  { %v1981_v32 = vpop.f32.mrb[26].mxu1 }
 0x83c   :  { %v3289_v43 = vpop.f32.mrb[27].mxu1  ;;  %2313 = vrot.lane.b32.xlu0 %v1984_v1, %s3503_s29 }
 0x841   :  { %v2105_v57 = vpop.f32.mrb[28].mxu1 }
 0x842   :  { %v2111_v42 = vmul.f32 %v2105_v57, %v4659_v10  ;;  %v3296_v35 = vpop.f32.mrb[29].mxu1  ;;  %2324 = vrot.lane.b32.xlu1 %v2105_v57, %s3501_s0 }
 0x843   :  { %v2108_v62 = vpop.f32.mrb[30].mxu1 }
 0x844   :  { %2317 = vst.msk [vmem:[#allocation2 + $0xc] sm:$0xf] %vm179_vm14, %v2111_v42  ;;  %v3297_v27 = vpop.f32.mrb[31].mxu1 }
 0x8ac   :  { %v2320_v3 = vpop.permute.xlu1 %2319 }
 0x8ad   :  { %2322 = vst.msk [vmem:[#allocation2 + $0xc] sm:$0xf] %vm2221_vm15, %v2320_v3 }
 0x8ae   :  { %v2314_v36 = vpop.permute.xlu0 %2313 }
 0x8af   :  { %2316 = vst.msk [vmem:[#allocation2 + $0x8] sm:$0xf] %vm2245_vm2, %v2314_v36 }
 0x8b4   :  { %v2325_v49 = vpop.permute.xlu1 %2324 }
 0x8b5   :  { %2327 = vst.msk [vmem:[#allocation2 + $0xc] sm:$0xf] %vm4660_vm9, %v2325_v49 }
 0x8bc   :  { %v2329_v18 = vld [vmem:[#allocation2 + $0x8] sm:$0xff] }
 0x8bd   :  { %v2353_v28 = vmul.f32 %v2349_v23, %v2329_v18 }
 0x8bf   :  { %v2378_v17 = vadd.f32 %v2374_v54, %v2353_v28 }
 0x8c1   :  { %v2442_v26 = vcombine.high %v2378_v17, %v2378_v17  ;;  %v2447_v38 = vpack.c.bf16 %v2378_v17, %v2378_v17 }
 0x8c3   :  { %v2448_v41 = vpack.c.bf16 %v2442_v26, %v2442_v26 }
 0x8c5   :  { %3028 = vmatprep.mubr.msk.bf16.mxu1 %vm2636_vm10, %v2448_v41 }
 0x8c6   :  { %2713 = vmatmul.mubr.bf16.vlgmr.msra.gmra.mrb[32].mxu1 %v2447_v38 }
 0x999   :  { %v2714_v58 = vpop.f32.mrb[32].mxu1 }
 0x99a   :  { %v2715_v20 = vadd.f32 %v2714_v58, %v2675_v24  ;;  %v2716_v40 = vpop.f32.mrb[33].mxu1 }
 0x99b   :  { %v2717_v61 = vpop.f32.mrb[34].mxu1 }
 0x99c   :  { %v2720_v15 = vmax.f32 %v2715_v20, 0.0  ;;  %v2718_v63 = vpop.f32.mrb[35].mxu1 }
 0x99e   :  { %v2725_v53 = vpack.c.bf16 %v2720_v15, %v2720_v15 }
 0x9a0   :  { %3303 = vmatmul.mubr.msk.bf16.vlgmr.msra.gmra.mrb[40].mxu0 %vm149_vm0, %v2725_v53 }
 0x9a1   :  { %3308 = vmatprep.mubr.msk.bf16.mxu0 %vm4644_vm7, %v4608_v6  ;;  %3307 = vmatpush3.bf16.msra.mxu0 %v3425_v34 }
 0xa73   :  { %v2782_v33 = vpop.f32.mrb[40].mxu0 }
 0xa74   :  { %v2783_v13 = vadd.f32 %v3029_v4, %v2782_v33  ;;  %v3304_v47 = vpop.f32.mrb[41].mxu0 }
 0xa75   :  { %v2785_v16 = vpop.f32.mrb[42].mxu0 }
 0xa76   :  { %v2788_v51 = vmax.f32 %v2783_v13, 0.0  ;;  %v3305_v31 = vpop.f32.mrb[43].mxu0 }
 0xa78   :  { %v2791_v19 = vpack.c.bf16 %v2788_v51, %v2788_v51 }
 0xa7a   :  { %3309 = vmatmul.mubr.msk.bf16.vlgmr.msra.gmra.mrb[44].mxu0 %vm2805_vm11, %v2791_v19 }
 0xb4d   :  { %v2843_v14 = vpop.f32.mrb[44].mxu0 }
 0xb4e   :  { %v2844_v56 = vadd.f32 %v3033_v59, %v2843_v14  ;;  %v3310_v0 = vpop.f32.mrb[45].mxu0 }
 0xb4f   :  { %v2846_v48 = vpop.f32.mrb[46].mxu0 }
 0xb50   :  { %v3311_v45 = vpop.f32.mrb[47].mxu0  ;;  %v2850_v6 = vsel %vm2849_vm12, %v2844_v56, -inf }
 0xb51   :  { %2851 = vmax.xlane.f32.xlu0 %v2850_v6 }
 0xbde   :  { %v2852_v21 = vpop.xlane.xlu0 %2851 }
 0xbdf   :  { %v2853_v29 = vsub.f32 %v2844_v56, %v2852_v21 }
 0xbe1   :  { %v2854_v37 = vmul.f32 1.442695, %v2853_v29 }
 0xbe3   :  { %3438 = vpow2.f32 %v2854_v37 }
 0xbed   :  { %v3439_v46 = vpop.eup %3438 }
 0xbee   :  { %v2856_v12 = vsel %vm2849_vm12, %v3439_v46, 0.0 }
 0xbef   :  { %2857 = vadd.xlane.f32.xlu1 %v2856_v12 }
 0xc7c   :  { %v2858_v44 = vpop.xlane.xlu1 %2857 }
 0xc7d   :  { %3440 = vlog2.f32 %v2858_v44 }
 0xc87   :  { %v3441_v10 = vpop.eup %3440 }
 0xc88   :  { %v2860_v1 = vmul.f32 0.6931472, %v3441_v10 }
 0xc8a   :  { %v2861_v30 = vadd.f32 %v2860_v1, %v2852_v21 }
 0xc8c   :  { %v2862_v32 = vsub.f32 %v2844_v56, %v2861_v30 }
 0xc8e   :  { %2863 = vst.msk [vmem:[#allocation3] sm:$0xf] %vm2849_vm12, %v2862_v32 }
 0xc8f   :  { %3454 = shalt.err (!%p3451_p4)
}
 0xc90   :  { %s3455_s7 = scalar_lea.hbm %s3674_s27, 64 }
 0xc91   :  { %p3456_p5 = scmp.ne.s32.totalorder %s3674_s27, %s3455_s7  ;;  %p3459_p6 = scmp.lt.u32.totalorder %s3455_s7, %s3674_s27 }
 0xc93   :  { %p3461_p7 = pnand %p3459_p6, %p3456_p5 }
 0xc95   :  { %3464 = shalt.err (!%p3461_p7)
}
 0xc96   :  { %2873 = dma.vmem_to_hbm [thread:$0]  %s2871_s24, 64, %s3674_s27, [#allocation4]  }
 0xc97   :  { %3465 = dma.done.wait [#allocation4], 64  }
 0xc98   :  { %3466 = vsyncadd [#allocation4], 4294967232 }
 0xc99   :  { %2877 = vsyncpa [#allocation4], 1 }

</bundles_post_ra>
